<compile_context>
chip_gen: v7x
topology: tpu7x:2x2x1
jax: 0.10.0
libtpu: 0.0.40
codegen_flags: <defaults>
</compile_context>

<pallas_src>
import jax
import jax.numpy as jnp
from jax.experimental import pallas as pl
from jax.experimental.pallas import tpu as pltpu


_TARGET_BLOCK_BYTES = 8 * 1024 * 1024      # ~8 MiB blocks: per-step overhead <7% even at v7x HBM BW
_VMEM_LIMIT_BYTES = 48 * 1024 * 1024       # 2 arrays x 2 bufs x 8 MiB = 32 MiB, + headroom (v7x phys 64 MiB)
_SMALL_FAST_PATH_BYTES = 512 * 1024        # below this, pallas_call launch cost loses to fused XLA multiply
_MAX_COLS = 4096                           # cap on lane-dense slab width


def _scale_kernel(scale_ref, x_ref, o_ref):
    # SMEM scalar read is free (scalar slot). Cast the scale to the input dtype and
    # multiply in that dtype: native bf16 VPU on v6e/v7x, f32 elsewhere.
    o_ref[...] = x_ref[...] * scale_ref[0, 0].astype(o_ref.dtype)


def _xla_scale(x, scale):
    # Fallback path with the same numerics as the kernel (scale cast to x.dtype).
    return x * jnp.asarray(scale, jnp.float32).astype(x.dtype)


def scale_layer(x: jax.Array, scale) -> jax.Array:
    """Pallas equivalent of ScaleLayer.forward: returns x * scale."""
    orig_shape = x.shape
    dtype = x.dtype
    total = int(x.size)
    if total == 0:
        return x

    # Integer dtypes: keep torch-style promotion semantics, no kernel.
    if not jnp.issubdtype(dtype, jnp.floating):
        return x * scale

    itemsize = jnp.dtype(dtype).itemsize
    nbytes = total * itemsize

    # Small-tensor fast path: fixed launch/DMA-setup cost dominates below ~512 KiB.
    if nbytes < _SMALL_FAST_PATH_BYTES:
        return _xla_scale(x, scale)

    # Lane-dense slab needs an exact multiple-of-128 factorization; a pad+slice
    # would add ~3x HBM traffic for a mem-bound op, so let XLA fuse instead.
    if total % 128 != 0:
        return _xla_scale(x, scale)

    sub = max(8, 32 // itemsize)   # sublane quantum: 8 (f32) / 16 (bf16) / 32 (8-bit)

    # Widest multiple-of-128 exact divisor of `total` (capped) that leaves >= sub rows.
    cols = 128
    c = 256
    while c <= _MAX_COLS:
        if total % c == 0 and (total // c) >= sub:
            cols = c
        c += 128
    rows = total // cols

    # Row tile sized by bytes and sublane-aligned. If multiple steps are needed,
    # balance them evenly (keeps both v7x TensorCores loaded; on single-TC chips
    # this never adds steps beyond what the byte target requires).
    tr_target = max(sub, (_TARGET_BLOCK_BYTES // (cols * itemsize)) // sub * sub)
    if rows <= tr_target:
        tr = rows                              # single full-dim block (always legal)
    else:
        nsteps = pl.cdiv(rows, tr_target)
        tr = pl.cdiv(pl.cdiv(rows, nsteps), sub) * sub
    grid = (pl.cdiv(rows, tr),)                # partial last block -> masked writes

    x2 = x.reshape(rows, cols)
    scale_arr = jnp.asarray(scale, jnp.float32).reshape(1, 1)

    out = pl.pallas_call(
        _scale_kernel,
        out_shape=jax.ShapeDtypeStruct((rows, cols), dtype),
        grid=grid,
        in_specs=[
            pl.BlockSpec((1, 1), lambda i: (0, 0),
                         memory_space=pltpu.MemorySpace.SMEM),
            pl.BlockSpec((tr, cols), lambda i: (i, 0)),
        ],
        out_specs=pl.BlockSpec((tr, cols), lambda i: (i, 0)),
        compiler_params=pltpu.CompilerParams(
            dimension_semantics=("parallel",),
            vmem_limit_bytes=_VMEM_LIMIT_BYTES,
        ),
        cost_estimate=pl.CostEstimate(
            flops=total, transcendentals=0, bytes_accessed=2 * nbytes),
    )(scale_arr, x2)

    return out.reshape(orig_shape)


if __name__ == "__main__":
    key = jax.random.PRNGKey(0)
    scale = 0.5  # deterministic "parameter" from __init__(scale)

    # Small NCHW input consistent with typical ScaleLayer use (takes the fast path).
    x_small = jax.random.normal(key, (2, 4, 16, 16), dtype=jnp.float32)
    y_small = jax.block_until_ready(scale_layer(x_small, scale))
    assert y_small.shape == x_small.shape and y_small.dtype == x_small.dtype
    assert jnp.array_equal(y_small, x_small * scale)

    # Larger (2 MiB) input that exercises the actual Pallas kernel path.
    x_big = jax.random.normal(jax.random.PRNGKey(0), (8, 16, 64, 64), dtype=jnp.float32)
    y_big = jax.block_until_ready(scale_layer(x_big, scale))
    assert y_big.shape == x_big.shape and y_big.dtype == x_big.dtype
    assert jnp.array_equal(y_big, x_big * scale)

    print("KERNEL_OK")
</pallas_src>

<mosaic_0001>
module attributes {stable_mosaic.version = 11 : i64} {
  func.func @_scale_kernel(%arg0: i32, %arg1: memref<1x1xf32, #tpu.memory_space<smem>>, %arg2: memref<128x4096xf32, #tpu.memory_space<vmem>>, %arg3: memref<128x4096xf32, #tpu.memory_space<vmem>>) attributes {dimension_semantics = [#tpu.dimension_semantics<parallel>], iteration_bounds = array<i64: 1>, scalar_prefetch = 0 : i64, scratch_operands = 0 : i64, tpu.core_type = #tpu.core_type<tc>, window_params = [{transform_indices = @transform_0, window_bounds = array<i64: 1, 1>}, {transform_indices = @transform_1, window_bounds = array<i64: 128, 4096>}, {transform_indices = @transform_2, window_bounds = array<i64: 128, 4096>}]} {
    %c0 = arith.constant 0 : index
    %c0_0 = arith.constant 0 : index
    %0 = vector.load %arg2[%c0, %c0_0] : memref<128x4096xf32, #tpu.memory_space<vmem>>, vector<128x4096xf32>
    %c0_1 = arith.constant 0 : index
    %c0_2 = arith.constant 0 : index
    %1 = memref.load %arg1[%c0_1, %c0_2] : memref<1x1xf32, #tpu.memory_space<smem>>
    %2 = vector.broadcast %1 : f32 to vector<128x4096xf32>
    %3 = arith.mulf %0, %2 : vector<128x4096xf32>
    %c0_3 = arith.constant 0 : index
    %c0_4 = arith.constant 0 : index
    %4 = vector.load %arg3[%c0_3, %c0_4] : memref<128x4096xf32, #tpu.memory_space<vmem>>, vector<128x4096xf32>
    tpu.vector_store %arg3[%c0_3, %c0_4], %3 {strides = array<i32>} : memref<128x4096xf32, #tpu.memory_space<vmem>>, vector<128x4096xf32>,
    return
  }
  func.func @transform_0(%arg0: i32) -> (i32, i32) {
    %c0_i32 = arith.constant 0 : i32
    %c0_i32_0 = arith.constant 0 : i32
    %c0_i32_1 = arith.constant 0 : i32
    return %c0_i32, %c0_i32_0 : i32, i32
  }
  func.func @transform_1(%arg0: i32) -> (i32, i32) {
    %c0_i32 = arith.constant 0 : i32
    %c0_i32_0 = arith.constant 0 : i32
    return %arg0, %c0_i32 : i32, i32
  }
  func.func @transform_2(%arg0: i32) -> (i32, i32) {
    %c0_i32 = arith.constant 0 : i32
    %c0_i32_0 = arith.constant 0 : i32
    return %arg0, %c0_i32 : i32, i32
  }
}

</mosaic_0001>

<bundles_post_ra>
// kernel: tpu_custom_call.1
= control target key start
LH: loop header
LB: loop body
LE: loop exit
PB: predicated region body
PF: predicated region fallthrough
CT: control target
= control target key end

     0   :  { %8 = vsyncpa [#allocation4], 0  ;;  %s2200_s0 = inlined_call_operand.<no memory space> [shape: f32[1,1], index: 0, kind: input, shape index: {}]   ;;  %s2201_s1 = inlined_call_operand.hbm [shape: f32[128,4096], index: 1, kind: input, shape index: {}]   ;;  %s2202_s2 = inlined_call_operand.hbm [shape: f32[128,4096], index: 2, kind: output, shape index: {}]  }
   0x1   :  { %9 = vsyncpa [#allocation5], 0  ;;  %s1634_s9 = smov [#allocation3]   ;;  %s1586_s13 = scalar_lea.hbm %s2201_s1, 65536 }
   0x2   :  { %s17_s10 = sshll.u32 %s1634_s9, 4  ;;  %p1587_p0 = scmp.ne.s32.totalorder %s2201_s1, %s1586_s13  ;;  %s18_s10 = int_to_ptr.vmem [resolvable:$true] %s17_s10 }
   0x3   :  { %p1590_p1 = scmp.lt.u32.totalorder %s1586_s13, %s2201_s1 }
   0x5   :  { %p1592_p2 = pnand %p1590_p1, %p1587_p0 }
   0x7   :  { %1595 = shalt.err (!%p1592_p2)
}
   0x8   :  { %s1596_s18 = scalar_lea.vmem %s18_s10, 65536  ;;  %p1601_p4 = scmp.lt.s32.totalorder %s18_s10, %s18_s10 }
   0x9   :  { %p1597_p3 = scmp.ne.s32.totalorder %s18_s10, %s1596_s18  ;;  %p1602_p5 = scmp.lt.s32.totalorder %s1596_s18, %s1596_s18 }
   0xb   :  { %p1603_p6 = por %p1602_p5, %p1601_p4 }
   0xd   :  { %p1604_p7 = pnand %p1603_p6, %p1597_p3 }
   0xf   :  { %1607 = shalt.err (!%p1604_p7)
}
  0x10   :  { %s1635_s19 = smov 4096   ;;  %s1636_s20 = smov 256  }
  0x11   :  { %23 = dma.hbm_to_vmem [thread:$0]  %s2201_s1, 65536, %s18_s10, [#allocation4], %s1635_s19, %s1635_s19, %s1636_s20  }
  0x12   :  { %1630 = dma.done.wait [#allocation4], 65536  }
  0x13   :  { %1631 = vsyncadd [#allocation4], 4294901760  ;;  %v1671_v0 = vstv %s2200_s0  ;;  %v27_v1 = vld [vmem:[#allocation3] sm:$0xff]  ;;  %v28_v2 = vld [vmem:[#allocation3 + $0x8] sm:$0xff]  ;;  %s1637_s0 = smov [#allocation6]  }
  0x14   :  { %v29_v3 = vld [vmem:[#allocation3 + $0x10] sm:$0xff]  ;;  %v541_v4 = vmul.f32 %v1671_v0, %v27_v1  ;;  %v542_v5 = vmul.f32 %v1671_v0, %v28_v2  ;;  %v30_v7 = vld [vmem:[#allocation3 + $0x18] sm:$0xff]  ;;  %v31_v8 = vld [vmem:[#allocation3 + $0x20] sm:$0xff]  ;;  %s1570_s1 = sshll.u32 %s1637_s0, 4  ;;  %s1571_s1 = int_to_ptr.vmem [resolvable:$true] %s1570_s1 }
  0x15   :  { %v543_v6 = vmul.f32 %v1671_v0, %v29_v3  ;;  %v32_v9 = vld [vmem:[#allocation3 + $0x28] sm:$0xff]  ;;  %v544_v10 = vmul.f32 %v1671_v0, %v30_v7  ;;  %v545_v11 = vmul.f32 %v1671_v0, %v31_v8  ;;  %v33_v13 = vld [vmem:[#allocation3 + $0x30] sm:$0xff]  ;;  %v34_v14 = vld [vmem:[#allocation3 + $0x38] sm:$0xff]  ;;  %s1608_s25 = scalar_lea.vmem %s1571_s1, 65536  ;;  %p1613_p9 = scmp.lt.s32.totalorder %s1571_s1, %s1571_s1 }
  0x16   :  { %v546_v12 = vmul.f32 %v1671_v0, %v32_v9  ;;  %v35_v15 = vld [vmem:[#allocation3 + $0x40] sm:$0xff]  ;;  %1053 = vst [vmem:[#allocation6] sm:$0xff] %v541_v4  ;;  %1054 = vst [vmem:[#allocation6 + $0x8] sm:$0xff] %v542_v5  ;;  %v547_v16 = vmul.f32 %v1671_v0, %v33_v13  ;;  %v548_v17 = vmul.f32 %v1671_v0, %v34_v14  ;;  %v36_v19 = vld [vmem:[#allocation3 + $0x48] sm:$0xff]  ;;  %p1609_p8 = scmp.ne.s32.totalorder %s1571_s1, %s1608_s25  ;;  %p1614_p10 = scmp.lt.s32.totalorder %s1608_s25, %s1608_s25 }
  0x17   :  { %1055 = vst [vmem:[#allocation6 + $0x10] sm:$0xff] %v543_v6  ;;  %v549_v18 = vmul.f32 %v1671_v0, %v35_v15  ;;  %v37_v20 = vld [vmem:[#allocation3 + $0x50] sm:$0xff]  ;;  %v38_v21 = vld [vmem:[#allocation3 + $0x58] sm:$0xff]  ;;  %1056 = vst [vmem:[#allocation6 + $0x18] sm:$0xff] %v544_v10  ;;  %v550_v22 = vmul.f32 %v1671_v0, %v36_v19 }
  0x18   :  { %1057 = vst [vmem:[#allocation6 + $0x20] sm:$0xff] %v545_v11  ;;  %1058 = vst [vmem:[#allocation6 + $0x28] sm:$0xff] %v546_v12  ;;  %v551_v23 = vmul.f32 %v1671_v0, %v37_v20  ;;  %v552_v24 = vmul.f32 %v1671_v0, %v38_v21  ;;  %v39_v25 = vld [vmem:[#allocation3 + $0x60] sm:$0xff]  ;;  %v40_v26 = vld [vmem:[#allocation3 + $0x68] sm:$0xff]  ;;  %p1615_p11 = por %p1614_p10, %p1613_p9 }
  0x19   :  { %v41_v27 = vld [vmem:[#allocation3 + $0x70] sm:$0xff]  ;;  %1059 = vst [vmem:[#allocation6 + $0x30] sm:$0xff] %v547_v16  ;;  %1060 = vst [vmem:[#allocation6 + $0x38] sm:$0xff] %v548_v17  ;;  %v553_v28 = vmul.f32 %v1671_v0, %v39_v25  ;;  %v554_v29 = vmul.f32 %v1671_v0, %v40_v26  ;;  %v42_v31 = vld [vmem:[#allocation3 + $0x78] sm:$0xff] }
  0x1a   :  { %1061 = vst [vmem:[#allocation6 + $0x40] sm:$0xff] %v549_v18  ;;  %v555_v30 = vmul.f32 %v1671_v0, %v41_v27  ;;  %v43_v32 = vld [vmem:[#allocation3 + $0x80] sm:$0xff]  ;;  %v44_v33 = vld [vmem:[#allocation3 + $0x88] sm:$0xff]  ;;  %1062 = vst [vmem:[#allocation6 + $0x48] sm:$0xff] %v550_v22  ;;  %v556_v34 = vmul.f32 %v1671_v0, %v42_v31  ;;  %p1616_p12 = pnand %p1615_p11, %p1609_p8 }
  0x1b   :  { %1063 = vst [vmem:[#allocation6 + $0x50] sm:$0xff] %v551_v23  ;;  %1064 = vst [vmem:[#allocation6 + $0x58] sm:$0xff] %v552_v24  ;;  %v557_v35 = vmul.f32 %v1671_v0, %v43_v32  ;;  %v558_v36 = vmul.f32 %v1671_v0, %v44_v33  ;;  %v45_v37 = vld [vmem:[#allocation3 + $0x90] sm:$0xff]  ;;  %v46_v38 = vld [vmem:[#allocation3 + $0x98] sm:$0xff] }
  0x1c   :  { %v47_v39 = vld [vmem:[#allocation3 + $0xa0] sm:$0xff]  ;;  %1065 = vst [vmem:[#allocation6 + $0x60] sm:$0xff] %v553_v28  ;;  %1066 = vst [vmem:[#allocation6 + $0x68] sm:$0xff] %v554_v29  ;;  %v559_v40 = vmul.f32 %v1671_v0, %v45_v37  ;;  %v560_v41 = vmul.f32 %v1671_v0, %v46_v38  ;;  %v48_v43 = vld [vmem:[#allocation3 + $0xa8] sm:$0xff] }
  0x1d   :  { %1067 = vst [vmem:[#allocation6 + $0x70] sm:$0xff] %v555_v30  ;;  %v561_v42 = vmul.f32 %v1671_v0, %v47_v39  ;;  %v49_v44 = vld [vmem:[#allocation3 + $0xb0] sm:$0xff]  ;;  %v50_v45 = vld [vmem:[#allocation3 + $0xb8] sm:$0xff]  ;;  %1068 = vst [vmem:[#allocation6 + $0x78] sm:$0xff] %v556_v34  ;;  %v562_v46 = vmul.f32 %v1671_v0, %v48_v43 }
  0x1e   :  { %1069 = vst [vmem:[#allocation6 + $0x80] sm:$0xff] %v557_v35  ;;  %1070 = vst [vmem:[#allocation6 + $0x88] sm:$0xff] %v558_v36  ;;  %v563_v47 = vmul.f32 %v1671_v0, %v49_v44  ;;  %v564_v48 = vmul.f32 %v1671_v0, %v50_v45  ;;  %v51_v49 = vld [vmem:[#allocation3 + $0xc0] sm:$0xff]  ;;  %v52_v50 = vld [vmem:[#allocation3 + $0xc8] sm:$0xff] }
  0x1f   :  { %v53_v51 = vld [vmem:[#allocation3 + $0xd0] sm:$0xff]  ;;  %1071 = vst [vmem:[#allocation6 + $0x90] sm:$0xff] %v559_v40  ;;  %1072 = vst [vmem:[#allocation6 + $0x98] sm:$0xff] %v560_v41  ;;  %v565_v52 = vmul.f32 %v1671_v0, %v51_v49  ;;  %v566_v53 = vmul.f32 %v1671_v0, %v52_v50  ;;  %v54_v55 = vld [vmem:[#allocation3 + $0xd8] sm:$0xff] }
  0x20   :  { %1073 = vst [vmem:[#allocation6 + $0xa0] sm:$0xff] %v561_v42  ;;  %v567_v54 = vmul.f32 %v1671_v0, %v53_v51  ;;  %v55_v56 = vld [vmem:[#allocation3 + $0xe0] sm:$0xff]  ;;  %v56_v57 = vld [vmem:[#allocation3 + $0xe8] sm:$0xff]  ;;  %1074 = vst [vmem:[#allocation6 + $0xa8] sm:$0xff] %v562_v46  ;;  %v568_v58 = vmul.f32 %v1671_v0, %v54_v55 }
  0x21   :  { %1075 = vst [vmem:[#allocation6 + $0xb0] sm:$0xff] %v563_v47  ;;  %1076 = vst [vmem:[#allocation6 + $0xb8] sm:$0xff] %v564_v48  ;;  %v569_v59 = vmul.f32 %v1671_v0, %v55_v56  ;;  %v570_v60 = vmul.f32 %v1671_v0, %v56_v57  ;;  %v57_v61 = vld [vmem:[#allocation3 + $0xf0] sm:$0xff]  ;;  %v58_v62 = vld [vmem:[#allocation3 + $0xf8] sm:$0xff] }
  0x22   :  { %v59_v63 = vld [vmem:[#allocation3 + $0x100] sm:$0xff]  ;;  %1077 = vst [vmem:[#allocation6 + $0xc0] sm:$0xff] %v565_v52  ;;  %1078 = vst [vmem:[#allocation6 + $0xc8] sm:$0xff] %v566_v53  ;;  %v571_v1 = vmul.f32 %v1671_v0, %v57_v61  ;;  %v572_v2 = vmul.f32 %v1671_v0, %v58_v62  ;;  %v60_v4 = vld [vmem:[#allocation3 + $0x108] sm:$0xff] }
  0x23   :  { %1079 = vst [vmem:[#allocation6 + $0xd0] sm:$0xff] %v567_v54  ;;  %v573_v3 = vmul.f32 %v1671_v0, %v59_v63  ;;  %v61_v5 = vld [vmem:[#allocation3 + $0x110] sm:$0xff]  ;;  %v62_v6 = vld [vmem:[#allocation3 + $0x118] sm:$0xff]  ;;  %1080 = vst [vmem:[#allocation6 + $0xd8] sm:$0xff] %v568_v58  ;;  %v574_v7 = vmul.f32 %v1671_v0, %v60_v4 }
  0x24   :  { %1081 = vst [vmem:[#allocation6 + $0xe0] sm:$0xff] %v569_v59  ;;  %1082 = vst [vmem:[#allocation6 + $0xe8] sm:$0xff] %v570_v60  ;;  %v575_v8 = vmul.f32 %v1671_v0, %v61_v5  ;;  %v576_v9 = vmul.f32 %v1671_v0, %v62_v6  ;;  %v63_v10 = vld [vmem:[#allocation3 + $0x120] sm:$0xff]  ;;  %v64_v11 = vld [vmem:[#allocation3 + $0x128] sm:$0xff] }
  0x25   :  { %v65_v12 = vld [vmem:[#allocation3 + $0x130] sm:$0xff]  ;;  %1083 = vst [vmem:[#allocation6 + $0xf0] sm:$0xff] %v571_v1  ;;  %1084 = vst [vmem:[#allocation6 + $0xf8] sm:$0xff] %v572_v2  ;;  %v577_v13 = vmul.f32 %v1671_v0, %v63_v10  ;;  %v578_v14 = vmul.f32 %v1671_v0, %v64_v11  ;;  %v66_v16 = vld [vmem:[#allocation3 + $0x138] sm:$0xff] }
  0x26   :  { %1085 = vst [vmem:[#allocation6 + $0x100] sm:$0xff] %v573_v3  ;;  %v579_v15 = vmul.f32 %v1671_v0, %v65_v12  ;;  %v67_v17 = vld [vmem:[#allocation3 + $0x140] sm:$0xff]  ;;  %v68_v18 = vld [vmem:[#allocation3 + $0x148] sm:$0xff]  ;;  %1086 = vst [vmem:[#allocation6 + $0x108] sm:$0xff] %v574_v7  ;;  %v580_v19 = vmul.f32 %v1671_v0, %v66_v16 }
  0x27   :  { %1087 = vst [vmem:[#allocation6 + $0x110] sm:$0xff] %v575_v8  ;;  %1088 = vst [vmem:[#allocation6 + $0x118] sm:$0xff] %v576_v9  ;;  %v581_v20 = vmul.f32 %v1671_v0, %v67_v17  ;;  %v582_v21 = vmul.f32 %v1671_v0, %v68_v18  ;;  %v69_v22 = vld [vmem:[#allocation3 + $0x150] sm:$0xff]  ;;  %v70_v23 = vld [vmem:[#allocation3 + $0x158] sm:$0xff] }
  0x28   :  { %v71_v24 = vld [vmem:[#allocation3 + $0x160] sm:$0xff]  ;;  %1089 = vst [vmem:[#allocation6 + $0x120] sm:$0xff] %v577_v13  ;;  %1090 = vst [vmem:[#allocation6 + $0x128] sm:$0xff] %v578_v14  ;;  %v583_v25 = vmul.f32 %v1671_v0, %v69_v22  ;;  %v584_v26 = vmul.f32 %v1671_v0, %v70_v23  ;;  %v72_v28 = vld [vmem:[#allocation3 + $0x168] sm:$0xff] }
  0x29   :  { %1091 = vst [vmem:[#allocation6 + $0x130] sm:$0xff] %v579_v15  ;;  %v585_v27 = vmul.f32 %v1671_v0, %v71_v24  ;;  %v73_v29 = vld [vmem:[#allocation3 + $0x170] sm:$0xff]  ;;  %v74_v30 = vld [vmem:[#allocation3 + $0x178] sm:$0xff]  ;;  %1092 = vst [vmem:[#allocation6 + $0x138] sm:$0xff] %v580_v19  ;;  %v586_v31 = vmul.f32 %v1671_v0, %v72_v28 }
  0x2a   :  { %1093 = vst [vmem:[#allocation6 + $0x140] sm:$0xff] %v581_v20  ;;  %1094 = vst [vmem:[#allocation6 + $0x148] sm:$0xff] %v582_v21  ;;  %v587_v32 = vmul.f32 %v1671_v0, %v73_v29  ;;  %v588_v33 = vmul.f32 %v1671_v0, %v74_v30  ;;  %v75_v34 = vld [vmem:[#allocation3 + $0x180] sm:$0xff]  ;;  %v76_v35 = vld [vmem:[#allocation3 + $0x188] sm:$0xff] }
  0x2b   :  { %v77_v36 = vld [vmem:[#allocation3 + $0x190] sm:$0xff]  ;;  %1095 = vst [vmem:[#allocation6 + $0x150] sm:$0xff] %v583_v25  ;;  %1096 = vst [vmem:[#allocation6 + $0x158] sm:$0xff] %v584_v26  ;;  %v589_v37 = vmul.f32 %v1671_v0, %v75_v34  ;;  %v590_v38 = vmul.f32 %v1671_v0, %v76_v35  ;;  %v78_v40 = vld [vmem:[#allocation3 + $0x198] sm:$0xff] }
  0x2c   :  { %1097 = vst [vmem:[#allocation6 + $0x160] sm:$0xff] %v585_v27  ;;  %v591_v39 = vmul.f32 %v1671_v0, %v77_v36  ;;  %v79_v41 = vld [vmem:[#allocation3 + $0x1a0] sm:$0xff]  ;;  %v80_v42 = vld [vmem:[#allocation3 + $0x1a8] sm:$0xff]  ;;  %1098 = vst [vmem:[#allocation6 + $0x168] sm:$0xff] %v586_v31  ;;  %v592_v43 = vmul.f32 %v1671_v0, %v78_v40 }
  0x2d   :  { %1099 = vst [vmem:[#allocation6 + $0x170] sm:$0xff] %v587_v32  ;;  %1100 = vst [vmem:[#allocation6 + $0x178] sm:$0xff] %v588_v33  ;;  %v593_v44 = vmul.f32 %v1671_v0, %v79_v41  ;;  %v594_v45 = vmul.f32 %v1671_v0, %v80_v42  ;;  %v81_v46 = vld [vmem:[#allocation3 + $0x1b0] sm:$0xff]  ;;  %v82_v47 = vld [vmem:[#allocation3 + $0x1b8] sm:$0xff] }
  0x2e   :  { %v83_v48 = vld [vmem:[#allocation3 + $0x1c0] sm:$0xff]  ;;  %1101 = vst [vmem:[#allocation6 + $0x180] sm:$0xff] %v589_v37  ;;  %1102 = vst [vmem:[#allocation6 + $0x188] sm:$0xff] %v590_v38  ;;  %v595_v49 = vmul.f32 %v1671_v0, %v81_v46  ;;  %v596_v50 = vmul.f32 %v1671_v0, %v82_v47  ;;  %v84_v52 = vld [vmem:[#allocation3 + $0x1c8] sm:$0xff] }
  0x2f   :  { %1103 = vst [vmem:[#allocation6 + $0x190] sm:$0xff] %v591_v39  ;;  %v597_v51 = vmul.f32 %v1671_v0, %v83_v48  ;;  %v85_v53 = vld [vmem:[#allocation3 + $0x1d0] sm:$0xff]  ;;  %v86_v54 = vld [vmem:[#allocation3 + $0x1d8] sm:$0xff]  ;;  %1104 = vst [vmem:[#allocation6 + $0x198] sm:$0xff] %v592_v43  ;;  %v598_v55 = vmul.f32 %v1671_v0, %v84_v52 }
  0x30   :  { %1105 = vst [vmem:[#allocation6 + $0x1a0] sm:$0xff] %v593_v44  ;;  %1106 = vst [vmem:[#allocation6 + $0x1a8] sm:$0xff] %v594_v45  ;;  %v599_v56 = vmul.f32 %v1671_v0, %v85_v53  ;;  %v600_v57 = vmul.f32 %v1671_v0, %v86_v54  ;;  %v87_v58 = vld [vmem:[#allocation3 + $0x1e0] sm:$0xff]  ;;  %v88_v59 = vld [vmem:[#allocation3 + $0x1e8] sm:$0xff] }
  0x31   :  { %v89_v60 = vld [vmem:[#allocation3 + $0x1f0] sm:$0xff]  ;;  %1107 = vst [vmem:[#allocation6 + $0x1b0] sm:$0xff] %v595_v49  ;;  %1108 = vst [vmem:[#allocation6 + $0x1b8] sm:$0xff] %v596_v50  ;;  %v601_v61 = vmul.f32 %v1671_v0, %v87_v58  ;;  %v602_v62 = vmul.f32 %v1671_v0, %v88_v59  ;;  %v90_v1 = vld [vmem:[#allocation3 + $0x1f8] sm:$0xff] }
  0x32   :  { %1109 = vst [vmem:[#allocation6 + $0x1c0] sm:$0xff] %v597_v51  ;;  %v603_v63 = vmul.f32 %v1671_v0, %v89_v60  ;;  %v91_v2 = vld [vmem:[#allocation3 + $0x200] sm:$0xff]  ;;  %v92_v3 = vld [vmem:[#allocation3 + $0x208] sm:$0xff]  ;;  %1110 = vst [vmem:[#allocation6 + $0x1c8] sm:$0xff] %v598_v55  ;;  %v604_v4 = vmul.f32 %v1671_v0, %v90_v1 }
  0x33   :  { %1111 = vst [vmem:[#allocation6 + $0x1d0] sm:$0xff] %v599_v56  ;;  %1112 = vst [vmem:[#allocation6 + $0x1d8] sm:$0xff] %v600_v57  ;;  %v605_v5 = vmul.f32 %v1671_v0, %v91_v2  ;;  %v606_v6 = vmul.f32 %v1671_v0, %v92_v3  ;;  %v93_v7 = vld [vmem:[#allocation3 + $0x210] sm:$0xff]  ;;  %v94_v8 = vld [vmem:[#allocation3 + $0x218] sm:$0xff] }
  0x34   :  { %v95_v9 = vld [vmem:[#allocation3 + $0x220] sm:$0xff]  ;;  %1113 = vst [vmem:[#allocation6 + $0x1e0] sm:$0xff] %v601_v61  ;;  %1114 = vst [vmem:[#allocation6 + $0x1e8] sm:$0xff] %v602_v62  ;;  %v607_v10 = vmul.f32 %v1671_v0, %v93_v7  ;;  %v608_v11 = vmul.f32 %v1671_v0, %v94_v8  ;;  %v96_v13 = vld [vmem:[#allocation3 + $0x228] sm:$0xff] }
  0x35   :  { %1115 = vst [vmem:[#allocation6 + $0x1f0] sm:$0xff] %v603_v63  ;;  %v609_v12 = vmul.f32 %v1671_v0, %v95_v9  ;;  %v97_v14 = vld [vmem:[#allocation3 + $0x230] sm:$0xff]  ;;  %v98_v15 = vld [vmem:[#allocation3 + $0x238] sm:$0xff]  ;;  %1116 = vst [vmem:[#allocation6 + $0x1f8] sm:$0xff] %v604_v4  ;;  %v610_v16 = vmul.f32 %v1671_v0, %v96_v13 }
  0x36   :  { %1117 = vst [vmem:[#allocation6 + $0x200] sm:$0xff] %v605_v5  ;;  %1118 = vst [vmem:[#allocation6 + $0x208] sm:$0xff] %v606_v6  ;;  %v611_v17 = vmul.f32 %v1671_v0, %v97_v14  ;;  %v612_v18 = vmul.f32 %v1671_v0, %v98_v15  ;;  %v99_v19 = vld [vmem:[#allocation3 + $0x240] sm:$0xff]  ;;  %v100_v20 = vld [vmem:[#allocation3 + $0x248] sm:$0xff] }
  0x37   :  { %v101_v21 = vld [vmem:[#allocation3 + $0x250] sm:$0xff]  ;;  %1119 = vst [vmem:[#allocation6 + $0x210] sm:$0xff] %v607_v10  ;;  %1120 = vst [vmem:[#allocation6 + $0x218] sm:$0xff] %v608_v11  ;;  %v613_v22 = vmul.f32 %v1671_v0, %v99_v19  ;;  %v614_v23 = vmul.f32 %v1671_v0, %v100_v20  ;;  %v102_v25 = vld [vmem:[#allocation3 + $0x258] sm:$0xff] }
  0x38   :  { %1121 = vst [vmem:[#allocation6 + $0x220] sm:$0xff] %v609_v12  ;;  %v615_v24 = vmul.f32 %v1671_v0, %v101_v21  ;;  %v103_v26 = vld [vmem:[#allocation3 + $0x260] sm:$0xff]  ;;  %v104_v27 = vld [vmem:[#allocation3 + $0x268] sm:$0xff]  ;;  %1122 = vst [vmem:[#allocation6 + $0x228] sm:$0xff] %v610_v16  ;;  %v616_v28 = vmul.f32 %v1671_v0, %v102_v25 }
  0x39   :  { %1123 = vst [vmem:[#allocation6 + $0x230] sm:$0xff] %v611_v17  ;;  %1124 = vst [vmem:[#allocation6 + $0x238] sm:$0xff] %v612_v18  ;;  %v617_v29 = vmul.f32 %v1671_v0, %v103_v26  ;;  %v618_v30 = vmul.f32 %v1671_v0, %v104_v27  ;;  %v105_v31 = vld [vmem:[#allocation3 + $0x270] sm:$0xff]  ;;  %v106_v32 = vld [vmem:[#allocation3 + $0x278] sm:$0xff] }
  0x3a   :  { %v107_v33 = vld [vmem:[#allocation3 + $0x280] sm:$0xff]  ;;  %1125 = vst [vmem:[#allocation6 + $0x240] sm:$0xff] %v613_v22  ;;  %1126 = vst [vmem:[#allocation6 + $0x248] sm:$0xff] %v614_v23  ;;  %v619_v34 = vmul.f32 %v1671_v0, %v105_v31  ;;  %v620_v35 = vmul.f32 %v1671_v0, %v106_v32  ;;  %v108_v37 = vld [vmem:[#allocation3 + $0x288] sm:$0xff] }
  0x3b   :  { %1127 = vst [vmem:[#allocation6 + $0x250] sm:$0xff] %v615_v24  ;;  %v621_v36 = vmul.f32 %v1671_v0, %v107_v33  ;;  %v109_v38 = vld [vmem:[#allocation3 + $0x290] sm:$0xff]  ;;  %v110_v39 = vld [vmem:[#allocation3 + $0x298] sm:$0xff]  ;;  %1128 = vst [vmem:[#allocation6 + $0x258] sm:$0xff] %v616_v28  ;;  %v622_v40 = vmul.f32 %v1671_v0, %v108_v37 }
  0x3c   :  { %1129 = vst [vmem:[#allocation6 + $0x260] sm:$0xff] %v617_v29  ;;  %1130 = vst [vmem:[#allocation6 + $0x268] sm:$0xff] %v618_v30  ;;  %v623_v41 = vmul.f32 %v1671_v0, %v109_v38  ;;  %v624_v42 = vmul.f32 %v1671_v0, %v110_v39  ;;  %v111_v43 = vld [vmem:[#allocation3 + $0x2a0] sm:$0xff]  ;;  %v112_v44 = vld [vmem:[#allocation3 + $0x2a8] sm:$0xff] }
  0x3d   :  { %v113_v45 = vld [vmem:[#allocation3 + $0x2b0] sm:$0xff]  ;;  %1131 = vst [vmem:[#allocation6 + $0x270] sm:$0xff] %v619_v34  ;;  %1132 = vst [vmem:[#allocation6 + $0x278] sm:$0xff] %v620_v35  ;;  %v625_v46 = vmul.f32 %v1671_v0, %v111_v43  ;;  %v626_v47 = vmul.f32 %v1671_v0, %v112_v44  ;;  %v114_v49 = vld [vmem:[#allocation3 + $0x2b8] sm:$0xff] }
  0x3e   :  { %1133 = vst [vmem:[#allocation6 + $0x280] sm:$0xff] %v621_v36  ;;  %v627_v48 = vmul.f32 %v1671_v0, %v113_v45  ;;  %v115_v50 = vld [vmem:[#allocation3 + $0x2c0] sm:$0xff]  ;;  %v116_v51 = vld [vmem:[#allocation3 + $0x2c8] sm:$0xff]  ;;  %1134 = vst [vmem:[#allocation6 + $0x288] sm:$0xff] %v622_v40  ;;  %v628_v52 = vmul.f32 %v1671_v0, %v114_v49 }
  0x3f   :  { %1135 = vst [vmem:[#allocation6 + $0x290] sm:$0xff] %v623_v41  ;;  %1136 = vst [vmem:[#allocation6 + $0x298] sm:$0xff] %v624_v42  ;;  %v629_v53 = vmul.f32 %v1671_v0, %v115_v50  ;;  %v630_v54 = vmul.f32 %v1671_v0, %v116_v51  ;;  %v117_v55 = vld [vmem:[#allocation3 + $0x2d0] sm:$0xff]  ;;  %v118_v56 = vld [vmem:[#allocation3 + $0x2d8] sm:$0xff] }
  0x40   :  { %v119_v57 = vld [vmem:[#allocation3 + $0x2e0] sm:$0xff]  ;;  %1137 = vst [vmem:[#allocation6 + $0x2a0] sm:$0xff] %v625_v46  ;;  %1138 = vst [vmem:[#allocation6 + $0x2a8] sm:$0xff] %v626_v47  ;;  %v631_v58 = vmul.f32 %v1671_v0, %v117_v55  ;;  %v632_v59 = vmul.f32 %v1671_v0, %v118_v56  ;;  %v120_v61 = vld [vmem:[#allocation3 + $0x2e8] sm:$0xff] }
  0x41   :  { %1139 = vst [vmem:[#allocation6 + $0x2b0] sm:$0xff] %v627_v48  ;;  %v633_v60 = vmul.f32 %v1671_v0, %v119_v57  ;;  %v121_v62 = vld [vmem:[#allocation3 + $0x2f0] sm:$0xff]  ;;  %v122_v63 = vld [vmem:[#allocation3 + $0x2f8] sm:$0xff]  ;;  %1140 = vst [vmem:[#allocation6 + $0x2b8] sm:$0xff] %v628_v52  ;;  %v634_v1 = vmul.f32 %v1671_v0, %v120_v61 }
  0x42   :  { %1141 = vst [vmem:[#allocation6 + $0x2c0] sm:$0xff] %v629_v53  ;;  %1142 = vst [vmem:[#allocation6 + $0x2c8] sm:$0xff] %v630_v54  ;;  %v635_v2 = vmul.f32 %v1671_v0, %v121_v62  ;;  %v636_v3 = vmul.f32 %v1671_v0, %v122_v63  ;;  %v123_v4 = vld [vmem:[#allocation3 + $0x300] sm:$0xff]  ;;  %v124_v5 = vld [vmem:[#allocation3 + $0x308] sm:$0xff] }
  0x43   :  { %v125_v6 = vld [vmem:[#allocation3 + $0x310] sm:$0xff]  ;;  %1143 = vst [vmem:[#allocation6 + $0x2d0] sm:$0xff] %v631_v58  ;;  %1144 = vst [vmem:[#allocation6 + $0x2d8] sm:$0xff] %v632_v59  ;;  %v637_v7 = vmul.f32 %v1671_v0, %v123_v4  ;;  %v638_v8 = vmul.f32 %v1671_v0, %v124_v5  ;;  %v126_v10 = vld [vmem:[#allocation3 + $0x318] sm:$0xff] }
  0x44   :  { %1145 = vst [vmem:[#allocation6 + $0x2e0] sm:$0xff] %v633_v60  ;;  %v639_v9 = vmul.f32 %v1671_v0, %v125_v6  ;;  %v127_v11 = vld [vmem:[#allocation3 + $0x320] sm:$0xff]  ;;  %v128_v12 = vld [vmem:[#allocation3 + $0x328] sm:$0xff]  ;;  %1146 = vst [vmem:[#allocation6 + $0x2e8] sm:$0xff] %v634_v1  ;;  %v640_v13 = vmul.f32 %v1671_v0, %v126_v10 }
  0x45   :  { %1147 = vst [vmem:[#allocation6 + $0x2f0] sm:$0xff] %v635_v2  ;;  %1148 = vst [vmem:[#allocation6 + $0x2f8] sm:$0xff] %v636_v3  ;;  %v641_v14 = vmul.f32 %v1671_v0, %v127_v11  ;;  %v642_v15 = vmul.f32 %v1671_v0, %v128_v12  ;;  %v129_v16 = vld [vmem:[#allocation3 + $0x330] sm:$0xff]  ;;  %v130_v17 = vld [vmem:[#allocation3 + $0x338] sm:$0xff] }
  0x46   :  { %v131_v18 = vld [vmem:[#allocation3 + $0x340] sm:$0xff]  ;;  %1149 = vst [vmem:[#allocation6 + $0x300] sm:$0xff] %v637_v7  ;;  %1150 = vst [vmem:[#allocation6 + $0x308] sm:$0xff] %v638_v8  ;;  %v643_v19 = vmul.f32 %v1671_v0, %v129_v16  ;;  %v644_v20 = vmul.f32 %v1671_v0, %v130_v17  ;;  %v132_v22 = vld [vmem:[#allocation3 + $0x348] sm:$0xff] }
  0x47   :  { %1151 = vst [vmem:[#allocation6 + $0x310] sm:$0xff] %v639_v9  ;;  %v645_v21 = vmul.f32 %v1671_v0, %v131_v18  ;;  %v133_v23 = vld [vmem:[#allocation3 + $0x350] sm:$0xff]  ;;  %v134_v24 = vld [vmem:[#allocation3 + $0x358] sm:$0xff]  ;;  %1152 = vst [vmem:[#allocation6 + $0x318] sm:$0xff] %v640_v13  ;;  %v646_v25 = vmul.f32 %v1671_v0, %v132_v22 }
  0x48   :  { %1153 = vst [vmem:[#allocation6 + $0x320] sm:$0xff] %v641_v14  ;;  %1154 = vst [vmem:[#allocation6 + $0x328] sm:$0xff] %v642_v15  ;;  %v647_v26 = vmul.f32 %v1671_v0, %v133_v23  ;;  %v648_v27 = vmul.f32 %v1671_v0, %v134_v24  ;;  %v135_v28 = vld [vmem:[#allocation3 + $0x360] sm:$0xff]  ;;  %v136_v29 = vld [vmem:[#allocation3 + $0x368] sm:$0xff] }
  0x49   :  { %v137_v30 = vld [vmem:[#allocation3 + $0x370] sm:$0xff]  ;;  %1155 = vst [vmem:[#allocation6 + $0x330] sm:$0xff] %v643_v19  ;;  %1156 = vst [vmem:[#allocation6 + $0x338] sm:$0xff] %v644_v20  ;;  %v649_v31 = vmul.f32 %v1671_v0, %v135_v28  ;;  %v650_v32 = vmul.f32 %v1671_v0, %v136_v29  ;;  %v138_v34 = vld [vmem:[#allocation3 + $0x378] sm:$0xff] }
  0x4a   :  { %1157 = vst [vmem:[#allocation6 + $0x340] sm:$0xff] %v645_v21  ;;  %v651_v33 = vmul.f32 %v1671_v0, %v137_v30  ;;  %v139_v35 = vld [vmem:[#allocation3 + $0x380] sm:$0xff]  ;;  %v140_v36 = vld [vmem:[#allocation3 + $0x388] sm:$0xff]  ;;  %1158 = vst [vmem:[#allocation6 + $0x348] sm:$0xff] %v646_v25  ;;  %v652_v37 = vmul.f32 %v1671_v0, %v138_v34 }
  0x4b   :  { %1159 = vst [vmem:[#allocation6 + $0x350] sm:$0xff] %v647_v26  ;;  %1160 = vst [vmem:[#allocation6 + $0x358] sm:$0xff] %v648_v27  ;;  %v653_v38 = vmul.f32 %v1671_v0, %v139_v35  ;;  %v654_v39 = vmul.f32 %v1671_v0, %v140_v36  ;;  %v141_v40 = vld [vmem:[#allocation3 + $0x390] sm:$0xff]  ;;  %v142_v41 = vld [vmem:[#allocation3 + $0x398] sm:$0xff] }
  0x4c   :  { %v143_v42 = vld [vmem:[#allocation3 + $0x3a0] sm:$0xff]  ;;  %1161 = vst [vmem:[#allocation6 + $0x360] sm:$0xff] %v649_v31  ;;  %1162 = vst [vmem:[#allocation6 + $0x368] sm:$0xff] %v650_v32  ;;  %v655_v43 = vmul.f32 %v1671_v0, %v141_v40  ;;  %v656_v44 = vmul.f32 %v1671_v0, %v142_v41  ;;  %v144_v46 = vld [vmem:[#allocation3 + $0x3a8] sm:$0xff] }
  0x4d   :  { %1163 = vst [vmem:[#allocation6 + $0x370] sm:$0xff] %v651_v33  ;;  %v657_v45 = vmul.f32 %v1671_v0, %v143_v42  ;;  %v145_v47 = vld [vmem:[#allocation3 + $0x3b0] sm:$0xff]  ;;  %v146_v48 = vld [vmem:[#allocation3 + $0x3b8] sm:$0xff]  ;;  %1164 = vst [vmem:[#allocation6 + $0x378] sm:$0xff] %v652_v37  ;;  %v658_v49 = vmul.f32 %v1671_v0, %v144_v46 }
  0x4e   :  { %1165 = vst [vmem:[#allocation6 + $0x380] sm:$0xff] %v653_v38  ;;  %1166 = vst [vmem:[#allocation6 + $0x388] sm:$0xff] %v654_v39  ;;  %v659_v50 = vmul.f32 %v1671_v0, %v145_v47  ;;  %v660_v51 = vmul.f32 %v1671_v0, %v146_v48  ;;  %v147_v52 = vld [vmem:[#allocation3 + $0x3c0] sm:$0xff]  ;;  %v148_v53 = vld [vmem:[#allocation3 + $0x3c8] sm:$0xff] }
  0x4f   :  { %v149_v54 = vld [vmem:[#allocation3 + $0x3d0] sm:$0xff]  ;;  %1167 = vst [vmem:[#allocation6 + $0x390] sm:$0xff] %v655_v43  ;;  %1168 = vst [vmem:[#allocation6 + $0x398] sm:$0xff] %v656_v44  ;;  %v661_v55 = vmul.f32 %v1671_v0, %v147_v52  ;;  %v662_v56 = vmul.f32 %v1671_v0, %v148_v53  ;;  %v150_v58 = vld [vmem:[#allocation3 + $0x3d8] sm:$0xff] }
  0x50   :  { %1169 = vst [vmem:[#allocation6 + $0x3a0] sm:$0xff] %v657_v45  ;;  %v663_v57 = vmul.f32 %v1671_v0, %v149_v54  ;;  %v151_v59 = vld [vmem:[#allocation3 + $0x3e0] sm:$0xff]  ;;  %v152_v60 = vld [vmem:[#allocation3 + $0x3e8] sm:$0xff]  ;;  %1170 = vst [vmem:[#allocation6 + $0x3a8] sm:$0xff] %v658_v49  ;;  %v664_v61 = vmul.f32 %v1671_v0, %v150_v58 }
  0x51   :  { %1171 = vst [vmem:[#allocation6 + $0x3b0] sm:$0xff] %v659_v50  ;;  %1172 = vst [vmem:[#allocation6 + $0x3b8] sm:$0xff] %v660_v51  ;;  %v665_v62 = vmul.f32 %v1671_v0, %v151_v59  ;;  %v666_v63 = vmul.f32 %v1671_v0, %v152_v60  ;;  %v153_v1 = vld [vmem:[#allocation3 + $0x3f0] sm:$0xff]  ;;  %v154_v2 = vld [vmem:[#allocation3 + $0x3f8] sm:$0xff] }
  0x52   :  { %v155_v3 = vld [vmem:[#allocation3 + $0x400] sm:$0xff]  ;;  %1173 = vst [vmem:[#allocation6 + $0x3c0] sm:$0xff] %v661_v55  ;;  %1174 = vst [vmem:[#allocation6 + $0x3c8] sm:$0xff] %v662_v56  ;;  %v667_v4 = vmul.f32 %v1671_v0, %v153_v1  ;;  %v668_v5 = vmul.f32 %v1671_v0, %v154_v2  ;;  %v156_v7 = vld [vmem:[#allocation3 + $0x408] sm:$0xff] }
  0x53   :  { %1175 = vst [vmem:[#allocation6 + $0x3d0] sm:$0xff] %v663_v57  ;;  %v669_v6 = vmul.f32 %v1671_v0, %v155_v3  ;;  %v157_v8 = vld [vmem:[#allocation3 + $0x410] sm:$0xff]  ;;  %v158_v9 = vld [vmem:[#allocation3 + $0x418] sm:$0xff]  ;;  %1176 = vst [vmem:[#allocation6 + $0x3d8] sm:$0xff] %v664_v61  ;;  %v670_v10 = vmul.f32 %v1671_v0, %v156_v7 }
  0x54   :  { %1177 = vst [vmem:[#allocation6 + $0x3e0] sm:$0xff] %v665_v62  ;;  %1178 = vst [vmem:[#allocation6 + $0x3e8] sm:$0xff] %v666_v63  ;;  %v671_v11 = vmul.f32 %v1671_v0, %v157_v8  ;;  %v672_v12 = vmul.f32 %v1671_v0, %v158_v9  ;;  %v159_v13 = vld [vmem:[#allocation3 + $0x420] sm:$0xff]  ;;  %v160_v14 = vld [vmem:[#allocation3 + $0x428] sm:$0xff] }
  0x55   :  { %v161_v15 = vld [vmem:[#allocation3 + $0x430] sm:$0xff]  ;;  %1179 = vst [vmem:[#allocation6 + $0x3f0] sm:$0xff] %v667_v4  ;;  %1180 = vst [vmem:[#allocation6 + $0x3f8] sm:$0xff] %v668_v5  ;;  %v673_v16 = vmul.f32 %v1671_v0, %v159_v13  ;;  %v674_v17 = vmul.f32 %v1671_v0, %v160_v14  ;;  %v162_v19 = vld [vmem:[#allocation3 + $0x438] sm:$0xff] }
  0x56   :  { %1181 = vst [vmem:[#allocation6 + $0x400] sm:$0xff] %v669_v6  ;;  %v675_v18 = vmul.f32 %v1671_v0, %v161_v15  ;;  %v163_v20 = vld [vmem:[#allocation3 + $0x440] sm:$0xff]  ;;  %v164_v21 = vld [vmem:[#allocation3 + $0x448] sm:$0xff]  ;;  %1182 = vst [vmem:[#allocation6 + $0x408] sm:$0xff] %v670_v10  ;;  %v676_v22 = vmul.f32 %v1671_v0, %v162_v19 }
  0x57   :  { %1183 = vst [vmem:[#allocation6 + $0x410] sm:$0xff] %v671_v11  ;;  %1184 = vst [vmem:[#allocation6 + $0x418] sm:$0xff] %v672_v12  ;;  %v677_v23 = vmul.f32 %v1671_v0, %v163_v20  ;;  %v678_v24 = vmul.f32 %v1671_v0, %v164_v21  ;;  %v165_v25 = vld [vmem:[#allocation3 + $0x450] sm:$0xff]  ;;  %v166_v26 = vld [vmem:[#allocation3 + $0x458] sm:$0xff] }
  0x58   :  { %v167_v27 = vld [vmem:[#allocation3 + $0x460] sm:$0xff]  ;;  %1185 = vst [vmem:[#allocation6 + $0x420] sm:$0xff] %v673_v16  ;;  %1186 = vst [vmem:[#allocation6 + $0x428] sm:$0xff] %v674_v17  ;;  %v679_v28 = vmul.f32 %v1671_v0, %v165_v25  ;;  %v680_v29 = vmul.f32 %v1671_v0, %v166_v26  ;;  %v168_v31 = vld [vmem:[#allocation3 + $0x468] sm:$0xff] }
  0x59   :  { %1187 = vst [vmem:[#allocation6 + $0x430] sm:$0xff] %v675_v18  ;;  %v681_v30 = vmul.f32 %v1671_v0, %v167_v27  ;;  %v169_v32 = vld [vmem:[#allocation3 + $0x470] sm:$0xff]  ;;  %v170_v33 = vld [vmem:[#allocation3 + $0x478] sm:$0xff]  ;;  %1188 = vst [vmem:[#allocation6 + $0x438] sm:$0xff] %v676_v22  ;;  %v682_v34 = vmul.f32 %v1671_v0, %v168_v31 }
  0x5a   :  { %1189 = vst [vmem:[#allocation6 + $0x440] sm:$0xff] %v677_v23  ;;  %1190 = vst [vmem:[#allocation6 + $0x448] sm:$0xff] %v678_v24  ;;  %v683_v35 = vmul.f32 %v1671_v0, %v169_v32  ;;  %v684_v36 = vmul.f32 %v1671_v0, %v170_v33  ;;  %v171_v37 = vld [vmem:[#allocation3 + $0x480] sm:$0xff]  ;;  %v172_v38 = vld [vmem:[#allocation3 + $0x488] sm:$0xff] }
  0x5b   :  { %v173_v39 = vld [vmem:[#allocation3 + $0x490] sm:$0xff]  ;;  %1191 = vst [vmem:[#allocation6 + $0x450] sm:$0xff] %v679_v28  ;;  %1192 = vst [vmem:[#allocation6 + $0x458] sm:$0xff] %v680_v29  ;;  %v685_v40 = vmul.f32 %v1671_v0, %v171_v37  ;;  %v686_v41 = vmul.f32 %v1671_v0, %v172_v38  ;;  %v174_v43 = vld [vmem:[#allocation3 + $0x498] sm:$0xff] }
  0x5c   :  { %1193 = vst [vmem:[#allocation6 + $0x460] sm:$0xff] %v681_v30  ;;  %v687_v42 = vmul.f32 %v1671_v0, %v173_v39  ;;  %v175_v44 = vld [vmem:[#allocation3 + $0x4a0] sm:$0xff]  ;;  %v176_v45 = vld [vmem:[#allocation3 + $0x4a8] sm:$0xff]  ;;  %1194 = vst [vmem:[#allocation6 + $0x468] sm:$0xff] %v682_v34  ;;  %v688_v46 = vmul.f32 %v1671_v0, %v174_v43 }
  0x5d   :  { %1195 = vst [vmem:[#allocation6 + $0x470] sm:$0xff] %v683_v35  ;;  %1196 = vst [vmem:[#allocation6 + $0x478] sm:$0xff] %v684_v36  ;;  %v689_v47 = vmul.f32 %v1671_v0, %v175_v44  ;;  %v690_v48 = vmul.f32 %v1671_v0, %v176_v45  ;;  %v177_v49 = vld [vmem:[#allocation3 + $0x4b0] sm:$0xff]  ;;  %v178_v50 = vld [vmem:[#allocation3 + $0x4b8] sm:$0xff] }
  0x5e   :  { %v179_v51 = vld [vmem:[#allocation3 + $0x4c0] sm:$0xff]  ;;  %1197 = vst [vmem:[#allocation6 + $0x480] sm:$0xff] %v685_v40  ;;  %1198 = vst [vmem:[#allocation6 + $0x488] sm:$0xff] %v686_v41  ;;  %v691_v52 = vmul.f32 %v1671_v0, %v177_v49  ;;  %v692_v53 = vmul.f32 %v1671_v0, %v178_v50  ;;  %v180_v55 = vld [vmem:[#allocation3 + $0x4c8] sm:$0xff] }
  0x5f   :  { %1199 = vst [vmem:[#allocation6 + $0x490] sm:$0xff] %v687_v42  ;;  %v693_v54 = vmul.f32 %v1671_v0, %v179_v51  ;;  %v181_v56 = vld [vmem:[#allocation3 + $0x4d0] sm:$0xff]  ;;  %v182_v57 = vld [vmem:[#allocation3 + $0x4d8] sm:$0xff]  ;;  %1200 = vst [vmem:[#allocation6 + $0x498] sm:$0xff] %v688_v46  ;;  %v694_v58 = vmul.f32 %v1671_v0, %v180_v55 }
  0x60   :  { %1201 = vst [vmem:[#allocation6 + $0x4a0] sm:$0xff] %v689_v47  ;;  %1202 = vst [vmem:[#allocation6 + $0x4a8] sm:$0xff] %v690_v48  ;;  %v695_v59 = vmul.f32 %v1671_v0, %v181_v56  ;;  %v696_v60 = vmul.f32 %v1671_v0, %v182_v57  ;;  %v183_v61 = vld [vmem:[#allocation3 + $0x4e0] sm:$0xff]  ;;  %v184_v62 = vld [vmem:[#allocation3 + $0x4e8] sm:$0xff] }
  0x61   :  { %v185_v63 = vld [vmem:[#allocation3 + $0x4f0] sm:$0xff]  ;;  %1203 = vst [vmem:[#allocation6 + $0x4b0] sm:$0xff] %v691_v52  ;;  %1204 = vst [vmem:[#allocation6 + $0x4b8] sm:$0xff] %v692_v53  ;;  %v697_v1 = vmul.f32 %v1671_v0, %v183_v61  ;;  %v698_v2 = vmul.f32 %v1671_v0, %v184_v62  ;;  %v186_v4 = vld [vmem:[#allocation3 + $0x4f8] sm:$0xff] }
  0x62   :  { %1205 = vst [vmem:[#allocation6 + $0x4c0] sm:$0xff] %v693_v54  ;;  %v699_v3 = vmul.f32 %v1671_v0, %v185_v63  ;;  %v187_v5 = vld [vmem:[#allocation3 + $0x500] sm:$0xff]  ;;  %v188_v6 = vld [vmem:[#allocation3 + $0x508] sm:$0xff]  ;;  %1206 = vst [vmem:[#allocation6 + $0x4c8] sm:$0xff] %v694_v58  ;;  %v700_v7 = vmul.f32 %v1671_v0, %v186_v4 }
  0x63   :  { %1207 = vst [vmem:[#allocation6 + $0x4d0] sm:$0xff] %v695_v59  ;;  %1208 = vst [vmem:[#allocation6 + $0x4d8] sm:$0xff] %v696_v60  ;;  %v701_v8 = vmul.f32 %v1671_v0, %v187_v5  ;;  %v702_v9 = vmul.f32 %v1671_v0, %v188_v6  ;;  %v189_v10 = vld [vmem:[#allocation3 + $0x510] sm:$0xff]  ;;  %v190_v11 = vld [vmem:[#allocation3 + $0x518] sm:$0xff] }
  0x64   :  { %v191_v12 = vld [vmem:[#allocation3 + $0x520] sm:$0xff]  ;;  %1209 = vst [vmem:[#allocation6 + $0x4e0] sm:$0xff] %v697_v1  ;;  %1210 = vst [vmem:[#allocation6 + $0x4e8] sm:$0xff] %v698_v2  ;;  %v703_v13 = vmul.f32 %v1671_v0, %v189_v10  ;;  %v704_v14 = vmul.f32 %v1671_v0, %v190_v11  ;;  %v192_v16 = vld [vmem:[#allocation3 + $0x528] sm:$0xff] }
  0x65   :  { %1211 = vst [vmem:[#allocation6 + $0x4f0] sm:$0xff] %v699_v3  ;;  %v705_v15 = vmul.f32 %v1671_v0, %v191_v12  ;;  %v193_v17 = vld [vmem:[#allocation3 + $0x530] sm:$0xff]  ;;  %v194_v18 = vld [vmem:[#allocation3 + $0x538] sm:$0xff]  ;;  %1212 = vst [vmem:[#allocation6 + $0x4f8] sm:$0xff] %v700_v7  ;;  %v706_v19 = vmul.f32 %v1671_v0, %v192_v16 }
  0x66   :  { %1213 = vst [vmem:[#allocation6 + $0x500] sm:$0xff] %v701_v8  ;;  %1214 = vst [vmem:[#allocation6 + $0x508] sm:$0xff] %v702_v9  ;;  %v707_v20 = vmul.f32 %v1671_v0, %v193_v17  ;;  %v708_v21 = vmul.f32 %v1671_v0, %v194_v18  ;;  %v195_v22 = vld [vmem:[#allocation3 + $0x540] sm:$0xff]  ;;  %v196_v23 = vld [vmem:[#allocation3 + $0x548] sm:$0xff] }
  0x67   :  { %v197_v24 = vld [vmem:[#allocation3 + $0x550] sm:$0xff]  ;;  %1215 = vst [vmem:[#allocation6 + $0x510] sm:$0xff] %v703_v13  ;;  %1216 = vst [vmem:[#allocation6 + $0x518] sm:$0xff] %v704_v14  ;;  %v709_v25 = vmul.f32 %v1671_v0, %v195_v22  ;;  %v710_v26 = vmul.f32 %v1671_v0, %v196_v23  ;;  %v198_v28 = vld [vmem:[#allocation3 + $0x558] sm:$0xff] }
  0x68   :  { %1217 = vst [vmem:[#allocation6 + $0x520] sm:$0xff] %v705_v15  ;;  %v711_v27 = vmul.f32 %v1671_v0, %v197_v24  ;;  %v199_v29 = vld [vmem:[#allocation3 + $0x560] sm:$0xff]  ;;  %v200_v30 = vld [vmem:[#allocation3 + $0x568] sm:$0xff]  ;;  %1218 = vst [vmem:[#allocation6 + $0x528] sm:$0xff] %v706_v19  ;;  %v712_v31 = vmul.f32 %v1671_v0, %v198_v28 }
  0x69   :  { %1219 = vst [vmem:[#allocation6 + $0x530] sm:$0xff] %v707_v20  ;;  %1220 = vst [vmem:[#allocation6 + $0x538] sm:$0xff] %v708_v21  ;;  %v713_v32 = vmul.f32 %v1671_v0, %v199_v29  ;;  %v714_v33 = vmul.f32 %v1671_v0, %v200_v30  ;;  %v201_v34 = vld [vmem:[#allocation3 + $0x570] sm:$0xff]  ;;  %v202_v35 = vld [vmem:[#allocation3 + $0x578] sm:$0xff] }
  0x6a   :  { %v203_v36 = vld [vmem:[#allocation3 + $0x580] sm:$0xff]  ;;  %1221 = vst [vmem:[#allocation6 + $0x540] sm:$0xff] %v709_v25  ;;  %1222 = vst [vmem:[#allocation6 + $0x548] sm:$0xff] %v710_v26  ;;  %v715_v37 = vmul.f32 %v1671_v0, %v201_v34  ;;  %v716_v38 = vmul.f32 %v1671_v0, %v202_v35  ;;  %v204_v40 = vld [vmem:[#allocation3 + $0x588] sm:$0xff] }
  0x6b   :  { %1223 = vst [vmem:[#allocation6 + $0x550] sm:$0xff] %v711_v27  ;;  %v717_v39 = vmul.f32 %v1671_v0, %v203_v36  ;;  %v205_v41 = vld [vmem:[#allocation3 + $0x590] sm:$0xff]  ;;  %v206_v42 = vld [vmem:[#allocation3 + $0x598] sm:$0xff]  ;;  %1224 = vst [vmem:[#allocation6 + $0x558] sm:$0xff] %v712_v31  ;;  %v718_v43 = vmul.f32 %v1671_v0, %v204_v40 }
  0x6c   :  { %1225 = vst [vmem:[#allocation6 + $0x560] sm:$0xff] %v713_v32  ;;  %1226 = vst [vmem:[#allocation6 + $0x568] sm:$0xff] %v714_v33  ;;  %v719_v44 = vmul.f32 %v1671_v0, %v205_v41  ;;  %v720_v45 = vmul.f32 %v1671_v0, %v206_v42  ;;  %v207_v46 = vld [vmem:[#allocation3 + $0x5a0] sm:$0xff]  ;;  %v208_v47 = vld [vmem:[#allocation3 + $0x5a8] sm:$0xff] }
  0x6d   :  { %v209_v48 = vld [vmem:[#allocation3 + $0x5b0] sm:$0xff]  ;;  %1227 = vst [vmem:[#allocation6 + $0x570] sm:$0xff] %v715_v37  ;;  %1228 = vst [vmem:[#allocation6 + $0x578] sm:$0xff] %v716_v38  ;;  %v721_v49 = vmul.f32 %v1671_v0, %v207_v46  ;;  %v722_v50 = vmul.f32 %v1671_v0, %v208_v47  ;;  %v210_v52 = vld [vmem:[#allocation3 + $0x5b8] sm:$0xff] }
  0x6e   :  { %1229 = vst [vmem:[#allocation6 + $0x580] sm:$0xff] %v717_v39  ;;  %v723_v51 = vmul.f32 %v1671_v0, %v209_v48  ;;  %v211_v53 = vld [vmem:[#allocation3 + $0x5c0] sm:$0xff]  ;;  %v212_v54 = vld [vmem:[#allocation3 + $0x5c8] sm:$0xff]  ;;  %1230 = vst [vmem:[#allocation6 + $0x588] sm:$0xff] %v718_v43  ;;  %v724_v55 = vmul.f32 %v1671_v0, %v210_v52 }
  0x6f   :  { %1231 = vst [vmem:[#allocation6 + $0x590] sm:$0xff] %v719_v44  ;;  %1232 = vst [vmem:[#allocation6 + $0x598] sm:$0xff] %v720_v45  ;;  %v725_v56 = vmul.f32 %v1671_v0, %v211_v53  ;;  %v726_v57 = vmul.f32 %v1671_v0, %v212_v54  ;;  %v213_v58 = vld [vmem:[#allocation3 + $0x5d0] sm:$0xff]  ;;  %v214_v59 = vld [vmem:[#allocation3 + $0x5d8] sm:$0xff] }
  0x70   :  { %v215_v60 = vld [vmem:[#allocation3 + $0x5e0] sm:$0xff]  ;;  %1233 = vst [vmem:[#allocation6 + $0x5a0] sm:$0xff] %v721_v49  ;;  %1234 = vst [vmem:[#allocation6 + $0x5a8] sm:$0xff] %v722_v50  ;;  %v727_v61 = vmul.f32 %v1671_v0, %v213_v58  ;;  %v728_v62 = vmul.f32 %v1671_v0, %v214_v59  ;;  %v216_v1 = vld [vmem:[#allocation3 + $0x5e8] sm:$0xff] }
  0x71   :  { %1235 = vst [vmem:[#allocation6 + $0x5b0] sm:$0xff] %v723_v51  ;;  %v729_v63 = vmul.f32 %v1671_v0, %v215_v60  ;;  %v217_v2 = vld [vmem:[#allocation3 + $0x5f0] sm:$0xff]  ;;  %v218_v3 = vld [vmem:[#allocation3 + $0x5f8] sm:$0xff]  ;;  %1236 = vst [vmem:[#allocation6 + $0x5b8] sm:$0xff] %v724_v55  ;;  %v730_v4 = vmul.f32 %v1671_v0, %v216_v1 }
  0x72   :  { %1237 = vst [vmem:[#allocation6 + $0x5c0] sm:$0xff] %v725_v56  ;;  %1238 = vst [vmem:[#allocation6 + $0x5c8] sm:$0xff] %v726_v57  ;;  %v731_v5 = vmul.f32 %v1671_v0, %v217_v2  ;;  %v732_v6 = vmul.f32 %v1671_v0, %v218_v3  ;;  %v219_v7 = vld [vmem:[#allocation3 + $0x600] sm:$0xff]  ;;  %v220_v8 = vld [vmem:[#allocation3 + $0x608] sm:$0xff] }
  0x73   :  { %v221_v9 = vld [vmem:[#allocation3 + $0x610] sm:$0xff]  ;;  %1239 = vst [vmem:[#allocation6 + $0x5d0] sm:$0xff] %v727_v61  ;;  %1240 = vst [vmem:[#allocation6 + $0x5d8] sm:$0xff] %v728_v62  ;;  %v733_v10 = vmul.f32 %v1671_v0, %v219_v7  ;;  %v734_v11 = vmul.f32 %v1671_v0, %v220_v8  ;;  %v222_v13 = vld [vmem:[#allocation3 + $0x618] sm:$0xff] }
  0x74   :  { %1241 = vst [vmem:[#allocation6 + $0x5e0] sm:$0xff] %v729_v63  ;;  %v735_v12 = vmul.f32 %v1671_v0, %v221_v9  ;;  %v223_v14 = vld [vmem:[#allocation3 + $0x620] sm:$0xff]  ;;  %v224_v15 = vld [vmem:[#allocation3 + $0x628] sm:$0xff]  ;;  %1242 = vst [vmem:[#allocation6 + $0x5e8] sm:$0xff] %v730_v4  ;;  %v736_v16 = vmul.f32 %v1671_v0, %v222_v13 }
  0x75   :  { %1243 = vst [vmem:[#allocation6 + $0x5f0] sm:$0xff] %v731_v5  ;;  %1244 = vst [vmem:[#allocation6 + $0x5f8] sm:$0xff] %v732_v6  ;;  %v737_v17 = vmul.f32 %v1671_v0, %v223_v14  ;;  %v738_v18 = vmul.f32 %v1671_v0, %v224_v15  ;;  %v225_v19 = vld [vmem:[#allocation3 + $0x630] sm:$0xff]  ;;  %v226_v20 = vld [vmem:[#allocation3 + $0x638] sm:$0xff] }
  0x76   :  { %v227_v21 = vld [vmem:[#allocation3 + $0x640] sm:$0xff]  ;;  %1245 = vst [vmem:[#allocation6 + $0x600] sm:$0xff] %v733_v10  ;;  %1246 = vst [vmem:[#allocation6 + $0x608] sm:$0xff] %v734_v11  ;;  %v739_v22 = vmul.f32 %v1671_v0, %v225_v19  ;;  %v740_v23 = vmul.f32 %v1671_v0, %v226_v20  ;;  %v228_v25 = vld [vmem:[#allocation3 + $0x648] sm:$0xff] }
  0x77   :  { %1247 = vst [vmem:[#allocation6 + $0x610] sm:$0xff] %v735_v12  ;;  %v741_v24 = vmul.f32 %v1671_v0, %v227_v21  ;;  %v229_v26 = vld [vmem:[#allocation3 + $0x650] sm:$0xff]  ;;  %v230_v27 = vld [vmem:[#allocation3 + $0x658] sm:$0xff]  ;;  %1248 = vst [vmem:[#allocation6 + $0x618] sm:$0xff] %v736_v16  ;;  %v742_v28 = vmul.f32 %v1671_v0, %v228_v25 }
  0x78   :  { %1249 = vst [vmem:[#allocation6 + $0x620] sm:$0xff] %v737_v17  ;;  %1250 = vst [vmem:[#allocation6 + $0x628] sm:$0xff] %v738_v18  ;;  %v743_v29 = vmul.f32 %v1671_v0, %v229_v26  ;;  %v744_v30 = vmul.f32 %v1671_v0, %v230_v27  ;;  %v231_v31 = vld [vmem:[#allocation3 + $0x660] sm:$0xff]  ;;  %v232_v32 = vld [vmem:[#allocation3 + $0x668] sm:$0xff] }
  0x79   :  { %v233_v33 = vld [vmem:[#allocation3 + $0x670] sm:$0xff]  ;;  %1251 = vst [vmem:[#allocation6 + $0x630] sm:$0xff] %v739_v22  ;;  %1252 = vst [vmem:[#allocation6 + $0x638] sm:$0xff] %v740_v23  ;;  %v745_v34 = vmul.f32 %v1671_v0, %v231_v31  ;;  %v746_v35 = vmul.f32 %v1671_v0, %v232_v32  ;;  %v234_v37 = vld [vmem:[#allocation3 + $0x678] sm:$0xff] }
  0x7a   :  { %1253 = vst [vmem:[#allocation6 + $0x640] sm:$0xff] %v741_v24  ;;  %v747_v36 = vmul.f32 %v1671_v0, %v233_v33  ;;  %v235_v38 = vld [vmem:[#allocation3 + $0x680] sm:$0xff]  ;;  %v236_v39 = vld [vmem:[#allocation3 + $0x688] sm:$0xff]  ;;  %1254 = vst [vmem:[#allocation6 + $0x648] sm:$0xff] %v742_v28  ;;  %v748_v40 = vmul.f32 %v1671_v0, %v234_v37 }
  0x7b   :  { %1255 = vst [vmem:[#allocation6 + $0x650] sm:$0xff] %v743_v29  ;;  %1256 = vst [vmem:[#allocation6 + $0x658] sm:$0xff] %v744_v30  ;;  %v749_v41 = vmul.f32 %v1671_v0, %v235_v38  ;;  %v750_v42 = vmul.f32 %v1671_v0, %v236_v39  ;;  %v237_v43 = vld [vmem:[#allocation3 + $0x690] sm:$0xff]  ;;  %v238_v44 = vld [vmem:[#allocation3 + $0x698] sm:$0xff] }
  0x7c   :  { %v239_v45 = vld [vmem:[#allocation3 + $0x6a0] sm:$0xff]  ;;  %1257 = vst [vmem:[#allocation6 + $0x660] sm:$0xff] %v745_v34  ;;  %1258 = vst [vmem:[#allocation6 + $0x668] sm:$0xff] %v746_v35  ;;  %v751_v46 = vmul.f32 %v1671_v0, %v237_v43  ;;  %v752_v47 = vmul.f32 %v1671_v0, %v238_v44  ;;  %v240_v49 = vld [vmem:[#allocation3 + $0x6a8] sm:$0xff] }
  0x7d   :  { %1259 = vst [vmem:[#allocation6 + $0x670] sm:$0xff] %v747_v36  ;;  %v753_v48 = vmul.f32 %v1671_v0, %v239_v45  ;;  %v241_v50 = vld [vmem:[#allocation3 + $0x6b0] sm:$0xff]  ;;  %v242_v51 = vld [vmem:[#allocation3 + $0x6b8] sm:$0xff]  ;;  %1260 = vst [vmem:[#allocation6 + $0x678] sm:$0xff] %v748_v40  ;;  %v754_v52 = vmul.f32 %v1671_v0, %v240_v49 }
  0x7e   :  { %1261 = vst [vmem:[#allocation6 + $0x680] sm:$0xff] %v749_v41  ;;  %1262 = vst [vmem:[#allocation6 + $0x688] sm:$0xff] %v750_v42  ;;  %v755_v53 = vmul.f32 %v1671_v0, %v241_v50  ;;  %v756_v54 = vmul.f32 %v1671_v0, %v242_v51  ;;  %v243_v55 = vld [vmem:[#allocation3 + $0x6c0] sm:$0xff]  ;;  %v244_v56 = vld [vmem:[#allocation3 + $0x6c8] sm:$0xff] }
  0x7f   :  { %v245_v57 = vld [vmem:[#allocation3 + $0x6d0] sm:$0xff]  ;;  %1263 = vst [vmem:[#allocation6 + $0x690] sm:$0xff] %v751_v46  ;;  %1264 = vst [vmem:[#allocation6 + $0x698] sm:$0xff] %v752_v47  ;;  %v757_v58 = vmul.f32 %v1671_v0, %v243_v55  ;;  %v758_v59 = vmul.f32 %v1671_v0, %v244_v56  ;;  %v246_v61 = vld [vmem:[#allocation3 + $0x6d8] sm:$0xff] }
  0x80   :  { %1265 = vst [vmem:[#allocation6 + $0x6a0] sm:$0xff] %v753_v48  ;;  %v759_v60 = vmul.f32 %v1671_v0, %v245_v57  ;;  %v247_v62 = vld [vmem:[#allocation3 + $0x6e0] sm:$0xff]  ;;  %v248_v63 = vld [vmem:[#allocation3 + $0x6e8] sm:$0xff]  ;;  %1266 = vst [vmem:[#allocation6 + $0x6a8] sm:$0xff] %v754_v52  ;;  %v760_v1 = vmul.f32 %v1671_v0, %v246_v61 }
  0x81   :  { %1267 = vst [vmem:[#allocation6 + $0x6b0] sm:$0xff] %v755_v53  ;;  %1268 = vst [vmem:[#allocation6 + $0x6b8] sm:$0xff] %v756_v54  ;;  %v761_v2 = vmul.f32 %v1671_v0, %v247_v62  ;;  %v762_v3 = vmul.f32 %v1671_v0, %v248_v63  ;;  %v249_v4 = vld [vmem:[#allocation3 + $0x6f0] sm:$0xff]  ;;  %v250_v5 = vld [vmem:[#allocation3 + $0x6f8] sm:$0xff] }
  0x82   :  { %v251_v6 = vld [vmem:[#allocation3 + $0x700] sm:$0xff]  ;;  %1269 = vst [vmem:[#allocation6 + $0x6c0] sm:$0xff] %v757_v58  ;;  %1270 = vst [vmem:[#allocation6 + $0x6c8] sm:$0xff] %v758_v59  ;;  %v763_v7 = vmul.f32 %v1671_v0, %v249_v4  ;;  %v764_v8 = vmul.f32 %v1671_v0, %v250_v5  ;;  %v252_v10 = vld [vmem:[#allocation3 + $0x708] sm:$0xff] }
  0x83   :  { %1271 = vst [vmem:[#allocation6 + $0x6d0] sm:$0xff] %v759_v60  ;;  %v765_v9 = vmul.f32 %v1671_v0, %v251_v6  ;;  %v253_v11 = vld [vmem:[#allocation3 + $0x710] sm:$0xff]  ;;  %v254_v12 = vld [vmem:[#allocation3 + $0x718] sm:$0xff]  ;;  %1272 = vst [vmem:[#allocation6 + $0x6d8] sm:$0xff] %v760_v1  ;;  %v766_v13 = vmul.f32 %v1671_v0, %v252_v10 }
  0x84   :  { %1273 = vst [vmem:[#allocation6 + $0x6e0] sm:$0xff] %v761_v2  ;;  %1274 = vst [vmem:[#allocation6 + $0x6e8] sm:$0xff] %v762_v3  ;;  %v767_v14 = vmul.f32 %v1671_v0, %v253_v11  ;;  %v768_v15 = vmul.f32 %v1671_v0, %v254_v12  ;;  %v255_v16 = vld [vmem:[#allocation3 + $0x720] sm:$0xff]  ;;  %v256_v17 = vld [vmem:[#allocation3 + $0x728] sm:$0xff] }
  0x85   :  { %v257_v18 = vld [vmem:[#allocation3 + $0x730] sm:$0xff]  ;;  %1275 = vst [vmem:[#allocation6 + $0x6f0] sm:$0xff] %v763_v7  ;;  %1276 = vst [vmem:[#allocation6 + $0x6f8] sm:$0xff] %v764_v8  ;;  %v769_v19 = vmul.f32 %v1671_v0, %v255_v16  ;;  %v770_v20 = vmul.f32 %v1671_v0, %v256_v17  ;;  %v258_v22 = vld [vmem:[#allocation3 + $0x738] sm:$0xff] }
  0x86   :  { %1277 = vst [vmem:[#allocation6 + $0x700] sm:$0xff] %v765_v9  ;;  %v771_v21 = vmul.f32 %v1671_v0, %v257_v18  ;;  %v259_v23 = vld [vmem:[#allocation3 + $0x740] sm:$0xff]  ;;  %v260_v24 = vld [vmem:[#allocation3 + $0x748] sm:$0xff]  ;;  %1278 = vst [vmem:[#allocation6 + $0x708] sm:$0xff] %v766_v13  ;;  %v772_v25 = vmul.f32 %v1671_v0, %v258_v22 }
  0x87   :  { %1279 = vst [vmem:[#allocation6 + $0x710] sm:$0xff] %v767_v14  ;;  %1280 = vst [vmem:[#allocation6 + $0x718] sm:$0xff] %v768_v15  ;;  %v773_v26 = vmul.f32 %v1671_v0, %v259_v23  ;;  %v774_v27 = vmul.f32 %v1671_v0, %v260_v24  ;;  %v261_v28 = vld [vmem:[#allocation3 + $0x750] sm:$0xff]  ;;  %v262_v29 = vld [vmem:[#allocation3 + $0x758] sm:$0xff] }
  0x88   :  { %v263_v30 = vld [vmem:[#allocation3 + $0x760] sm:$0xff]  ;;  %1281 = vst [vmem:[#allocation6 + $0x720] sm:$0xff] %v769_v19  ;;  %1282 = vst [vmem:[#allocation6 + $0x728] sm:$0xff] %v770_v20  ;;  %v775_v31 = vmul.f32 %v1671_v0, %v261_v28  ;;  %v776_v32 = vmul.f32 %v1671_v0, %v262_v29  ;;  %v264_v34 = vld [vmem:[#allocation3 + $0x768] sm:$0xff] }
  0x89   :  { %1283 = vst [vmem:[#allocation6 + $0x730] sm:$0xff] %v771_v21  ;;  %v777_v33 = vmul.f32 %v1671_v0, %v263_v30  ;;  %v265_v35 = vld [vmem:[#allocation3 + $0x770] sm:$0xff]  ;;  %v266_v36 = vld [vmem:[#allocation3 + $0x778] sm:$0xff]  ;;  %1284 = vst [vmem:[#allocation6 + $0x738] sm:$0xff] %v772_v25  ;;  %v778_v37 = vmul.f32 %v1671_v0, %v264_v34 }
  0x8a   :  { %1285 = vst [vmem:[#allocation6 + $0x740] sm:$0xff] %v773_v26  ;;  %1286 = vst [vmem:[#allocation6 + $0x748] sm:$0xff] %v774_v27  ;;  %v779_v38 = vmul.f32 %v1671_v0, %v265_v35  ;;  %v780_v39 = vmul.f32 %v1671_v0, %v266_v36  ;;  %v267_v40 = vld [vmem:[#allocation3 + $0x780] sm:$0xff]  ;;  %v268_v41 = vld [vmem:[#allocation3 + $0x788] sm:$0xff] }
  0x8b   :  { %v269_v42 = vld [vmem:[#allocation3 + $0x790] sm:$0xff]  ;;  %1287 = vst [vmem:[#allocation6 + $0x750] sm:$0xff] %v775_v31  ;;  %1288 = vst [vmem:[#allocation6 + $0x758] sm:$0xff] %v776_v32  ;;  %v781_v43 = vmul.f32 %v1671_v0, %v267_v40  ;;  %v782_v44 = vmul.f32 %v1671_v0, %v268_v41  ;;  %v270_v46 = vld [vmem:[#allocation3 + $0x798] sm:$0xff] }
  0x8c   :  { %1289 = vst [vmem:[#allocation6 + $0x760] sm:$0xff] %v777_v33  ;;  %v783_v45 = vmul.f32 %v1671_v0, %v269_v42  ;;  %v271_v47 = vld [vmem:[#allocation3 + $0x7a0] sm:$0xff]  ;;  %v272_v48 = vld [vmem:[#allocation3 + $0x7a8] sm:$0xff]  ;;  %1290 = vst [vmem:[#allocation6 + $0x768] sm:$0xff] %v778_v37  ;;  %v784_v49 = vmul.f32 %v1671_v0, %v270_v46 }
  0x8d   :  { %1291 = vst [vmem:[#allocation6 + $0x770] sm:$0xff] %v779_v38  ;;  %1292 = vst [vmem:[#allocation6 + $0x778] sm:$0xff] %v780_v39  ;;  %v785_v50 = vmul.f32 %v1671_v0, %v271_v47  ;;  %v786_v51 = vmul.f32 %v1671_v0, %v272_v48  ;;  %v273_v52 = vld [vmem:[#allocation3 + $0x7b0] sm:$0xff]  ;;  %v274_v53 = vld [vmem:[#allocation3 + $0x7b8] sm:$0xff] }
  0x8e   :  { %v275_v54 = vld [vmem:[#allocation3 + $0x7c0] sm:$0xff]  ;;  %1293 = vst [vmem:[#allocation6 + $0x780] sm:$0xff] %v781_v43  ;;  %1294 = vst [vmem:[#allocation6 + $0x788] sm:$0xff] %v782_v44  ;;  %v787_v55 = vmul.f32 %v1671_v0, %v273_v52  ;;  %v788_v56 = vmul.f32 %v1671_v0, %v274_v53  ;;  %v276_v58 = vld [vmem:[#allocation3 + $0x7c8] sm:$0xff] }
  0x8f   :  { %1295 = vst [vmem:[#allocation6 + $0x790] sm:$0xff] %v783_v45  ;;  %v789_v57 = vmul.f32 %v1671_v0, %v275_v54  ;;  %v277_v59 = vld [vmem:[#allocation3 + $0x7d0] sm:$0xff]  ;;  %v278_v60 = vld [vmem:[#allocation3 + $0x7d8] sm:$0xff]  ;;  %1296 = vst [vmem:[#allocation6 + $0x798] sm:$0xff] %v784_v49  ;;  %v790_v61 = vmul.f32 %v1671_v0, %v276_v58 }
  0x90   :  { %1297 = vst [vmem:[#allocation6 + $0x7a0] sm:$0xff] %v785_v50  ;;  %1298 = vst [vmem:[#allocation6 + $0x7a8] sm:$0xff] %v786_v51  ;;  %v791_v62 = vmul.f32 %v1671_v0, %v277_v59  ;;  %v792_v63 = vmul.f32 %v1671_v0, %v278_v60  ;;  %v279_v1 = vld [vmem:[#allocation3 + $0x7e0] sm:$0xff]  ;;  %v280_v2 = vld [vmem:[#allocation3 + $0x7e8] sm:$0xff] }
  0x91   :  { %v281_v3 = vld [vmem:[#allocation3 + $0x7f0] sm:$0xff]  ;;  %1299 = vst [vmem:[#allocation6 + $0x7b0] sm:$0xff] %v787_v55  ;;  %1300 = vst [vmem:[#allocation6 + $0x7b8] sm:$0xff] %v788_v56  ;;  %v793_v4 = vmul.f32 %v1671_v0, %v279_v1  ;;  %v794_v5 = vmul.f32 %v1671_v0, %v280_v2  ;;  %v282_v7 = vld [vmem:[#allocation3 + $0x7f8] sm:$0xff] }
  0x92   :  { %1301 = vst [vmem:[#allocation6 + $0x7c0] sm:$0xff] %v789_v57  ;;  %v795_v6 = vmul.f32 %v1671_v0, %v281_v3  ;;  %v283_v8 = vld [vmem:[#allocation3 + $0x800] sm:$0xff]  ;;  %v284_v9 = vld [vmem:[#allocation3 + $0x808] sm:$0xff]  ;;  %1302 = vst [vmem:[#allocation6 + $0x7c8] sm:$0xff] %v790_v61  ;;  %v796_v10 = vmul.f32 %v1671_v0, %v282_v7 }
  0x93   :  { %1303 = vst [vmem:[#allocation6 + $0x7d0] sm:$0xff] %v791_v62  ;;  %1304 = vst [vmem:[#allocation6 + $0x7d8] sm:$0xff] %v792_v63  ;;  %v797_v11 = vmul.f32 %v1671_v0, %v283_v8  ;;  %v798_v12 = vmul.f32 %v1671_v0, %v284_v9  ;;  %v285_v13 = vld [vmem:[#allocation3 + $0x810] sm:$0xff]  ;;  %v286_v14 = vld [vmem:[#allocation3 + $0x818] sm:$0xff] }
  0x94   :  { %v287_v15 = vld [vmem:[#allocation3 + $0x820] sm:$0xff]  ;;  %1305 = vst [vmem:[#allocation6 + $0x7e0] sm:$0xff] %v793_v4  ;;  %1306 = vst [vmem:[#allocation6 + $0x7e8] sm:$0xff] %v794_v5  ;;  %v799_v16 = vmul.f32 %v1671_v0, %v285_v13  ;;  %v800_v17 = vmul.f32 %v1671_v0, %v286_v14  ;;  %v288_v19 = vld [vmem:[#allocation3 + $0x828] sm:$0xff] }
  0x95   :  { %1307 = vst [vmem:[#allocation6 + $0x7f0] sm:$0xff] %v795_v6  ;;  %v801_v18 = vmul.f32 %v1671_v0, %v287_v15  ;;  %v289_v20 = vld [vmem:[#allocation3 + $0x830] sm:$0xff]  ;;  %v290_v21 = vld [vmem:[#allocation3 + $0x838] sm:$0xff]  ;;  %1308 = vst [vmem:[#allocation6 + $0x7f8] sm:$0xff] %v796_v10  ;;  %v802_v22 = vmul.f32 %v1671_v0, %v288_v19 }
  0x96   :  { %1309 = vst [vmem:[#allocation6 + $0x800] sm:$0xff] %v797_v11  ;;  %1310 = vst [vmem:[#allocation6 + $0x808] sm:$0xff] %v798_v12  ;;  %v803_v23 = vmul.f32 %v1671_v0, %v289_v20  ;;  %v804_v24 = vmul.f32 %v1671_v0, %v290_v21  ;;  %v291_v25 = vld [vmem:[#allocation3 + $0x840] sm:$0xff]  ;;  %v292_v26 = vld [vmem:[#allocation3 + $0x848] sm:$0xff] }
  0x97   :  { %v293_v27 = vld [vmem:[#allocation3 + $0x850] sm:$0xff]  ;;  %1311 = vst [vmem:[#allocation6 + $0x810] sm:$0xff] %v799_v16  ;;  %1312 = vst [vmem:[#allocation6 + $0x818] sm:$0xff] %v800_v17  ;;  %v805_v28 = vmul.f32 %v1671_v0, %v291_v25  ;;  %v806_v29 = vmul.f32 %v1671_v0, %v292_v26  ;;  %v294_v31 = vld [vmem:[#allocation3 + $0x858] sm:$0xff] }
  0x98   :  { %1313 = vst [vmem:[#allocation6 + $0x820] sm:$0xff] %v801_v18  ;;  %v807_v30 = vmul.f32 %v1671_v0, %v293_v27  ;;  %v295_v32 = vld [vmem:[#allocation3 + $0x860] sm:$0xff]  ;;  %v296_v33 = vld [vmem:[#allocation3 + $0x868] sm:$0xff]  ;;  %1314 = vst [vmem:[#allocation6 + $0x828] sm:$0xff] %v802_v22  ;;  %v808_v34 = vmul.f32 %v1671_v0, %v294_v31 }
  0x99   :  { %1315 = vst [vmem:[#allocation6 + $0x830] sm:$0xff] %v803_v23  ;;  %1316 = vst [vmem:[#allocation6 + $0x838] sm:$0xff] %v804_v24  ;;  %v809_v35 = vmul.f32 %v1671_v0, %v295_v32  ;;  %v810_v36 = vmul.f32 %v1671_v0, %v296_v33  ;;  %v297_v37 = vld [vmem:[#allocation3 + $0x870] sm:$0xff]  ;;  %v298_v38 = vld [vmem:[#allocation3 + $0x878] sm:$0xff] }
  0x9a   :  { %v299_v39 = vld [vmem:[#allocation3 + $0x880] sm:$0xff]  ;;  %1317 = vst [vmem:[#allocation6 + $0x840] sm:$0xff] %v805_v28  ;;  %1318 = vst [vmem:[#allocation6 + $0x848] sm:$0xff] %v806_v29  ;;  %v811_v40 = vmul.f32 %v1671_v0, %v297_v37  ;;  %v812_v41 = vmul.f32 %v1671_v0, %v298_v38  ;;  %v300_v43 = vld [vmem:[#allocation3 + $0x888] sm:$0xff] }
  0x9b   :  { %1319 = vst [vmem:[#allocation6 + $0x850] sm:$0xff] %v807_v30  ;;  %v813_v42 = vmul.f32 %v1671_v0, %v299_v39  ;;  %v301_v44 = vld [vmem:[#allocation3 + $0x890] sm:$0xff]  ;;  %v302_v45 = vld [vmem:[#allocation3 + $0x898] sm:$0xff]  ;;  %1320 = vst [vmem:[#allocation6 + $0x858] sm:$0xff] %v808_v34  ;;  %v814_v46 = vmul.f32 %v1671_v0, %v300_v43 }
  0x9c   :  { %1321 = vst [vmem:[#allocation6 + $0x860] sm:$0xff] %v809_v35  ;;  %1322 = vst [vmem:[#allocation6 + $0x868] sm:$0xff] %v810_v36  ;;  %v815_v47 = vmul.f32 %v1671_v0, %v301_v44  ;;  %v816_v48 = vmul.f32 %v1671_v0, %v302_v45  ;;  %v303_v49 = vld [vmem:[#allocation3 + $0x8a0] sm:$0xff]  ;;  %v304_v50 = vld [vmem:[#allocation3 + $0x8a8] sm:$0xff] }
  0x9d   :  { %v305_v51 = vld [vmem:[#allocation3 + $0x8b0] sm:$0xff]  ;;  %1323 = vst [vmem:[#allocation6 + $0x870] sm:$0xff] %v811_v40  ;;  %1324 = vst [vmem:[#allocation6 + $0x878] sm:$0xff] %v812_v41  ;;  %v817_v52 = vmul.f32 %v1671_v0, %v303_v49  ;;  %v818_v53 = vmul.f32 %v1671_v0, %v304_v50  ;;  %v306_v55 = vld [vmem:[#allocation3 + $0x8b8] sm:$0xff] }
  0x9e   :  { %1325 = vst [vmem:[#allocation6 + $0x880] sm:$0xff] %v813_v42  ;;  %v819_v54 = vmul.f32 %v1671_v0, %v305_v51  ;;  %v307_v56 = vld [vmem:[#allocation3 + $0x8c0] sm:$0xff]  ;;  %v308_v57 = vld [vmem:[#allocation3 + $0x8c8] sm:$0xff]  ;;  %1326 = vst [vmem:[#allocation6 + $0x888] sm:$0xff] %v814_v46  ;;  %v820_v58 = vmul.f32 %v1671_v0, %v306_v55 }
  0x9f   :  { %1327 = vst [vmem:[#allocation6 + $0x890] sm:$0xff] %v815_v47  ;;  %1328 = vst [vmem:[#allocation6 + $0x898] sm:$0xff] %v816_v48  ;;  %v821_v59 = vmul.f32 %v1671_v0, %v307_v56  ;;  %v822_v60 = vmul.f32 %v1671_v0, %v308_v57  ;;  %v309_v61 = vld [vmem:[#allocation3 + $0x8d0] sm:$0xff]  ;;  %v310_v62 = vld [vmem:[#allocation3 + $0x8d8] sm:$0xff] }
  0xa0   :  { %v311_v63 = vld [vmem:[#allocation3 + $0x8e0] sm:$0xff]  ;;  %1329 = vst [vmem:[#allocation6 + $0x8a0] sm:$0xff] %v817_v52  ;;  %1330 = vst [vmem:[#allocation6 + $0x8a8] sm:$0xff] %v818_v53  ;;  %v823_v1 = vmul.f32 %v1671_v0, %v309_v61  ;;  %v824_v2 = vmul.f32 %v1671_v0, %v310_v62  ;;  %v312_v4 = vld [vmem:[#allocation3 + $0x8e8] sm:$0xff] }
  0xa1   :  { %1331 = vst [vmem:[#allocation6 + $0x8b0] sm:$0xff] %v819_v54  ;;  %v825_v3 = vmul.f32 %v1671_v0, %v311_v63  ;;  %v313_v5 = vld [vmem:[#allocation3 + $0x8f0] sm:$0xff]  ;;  %v314_v6 = vld [vmem:[#allocation3 + $0x8f8] sm:$0xff]  ;;  %1332 = vst [vmem:[#allocation6 + $0x8b8] sm:$0xff] %v820_v58  ;;  %v826_v7 = vmul.f32 %v1671_v0, %v312_v4 }
  0xa2   :  { %1333 = vst [vmem:[#allocation6 + $0x8c0] sm:$0xff] %v821_v59  ;;  %1334 = vst [vmem:[#allocation6 + $0x8c8] sm:$0xff] %v822_v60  ;;  %v827_v8 = vmul.f32 %v1671_v0, %v313_v5  ;;  %v828_v9 = vmul.f32 %v1671_v0, %v314_v6  ;;  %v315_v10 = vld [vmem:[#allocation3 + $0x900] sm:$0xff]  ;;  %v316_v11 = vld [vmem:[#allocation3 + $0x908] sm:$0xff] }
  0xa3   :  { %v317_v12 = vld [vmem:[#allocation3 + $0x910] sm:$0xff]  ;;  %1335 = vst [vmem:[#allocation6 + $0x8d0] sm:$0xff] %v823_v1  ;;  %1336 = vst [vmem:[#allocation6 + $0x8d8] sm:$0xff] %v824_v2  ;;  %v829_v13 = vmul.f32 %v1671_v0, %v315_v10  ;;  %v830_v14 = vmul.f32 %v1671_v0, %v316_v11  ;;  %v318_v16 = vld [vmem:[#allocation3 + $0x918] sm:$0xff] }
  0xa4   :  { %1337 = vst [vmem:[#allocation6 + $0x8e0] sm:$0xff] %v825_v3  ;;  %v831_v15 = vmul.f32 %v1671_v0, %v317_v12  ;;  %v319_v17 = vld [vmem:[#allocation3 + $0x920] sm:$0xff]  ;;  %v320_v18 = vld [vmem:[#allocation3 + $0x928] sm:$0xff]  ;;  %1338 = vst [vmem:[#allocation6 + $0x8e8] sm:$0xff] %v826_v7  ;;  %v832_v19 = vmul.f32 %v1671_v0, %v318_v16 }
  0xa5   :  { %1339 = vst [vmem:[#allocation6 + $0x8f0] sm:$0xff] %v827_v8  ;;  %1340 = vst [vmem:[#allocation6 + $0x8f8] sm:$0xff] %v828_v9  ;;  %v833_v20 = vmul.f32 %v1671_v0, %v319_v17  ;;  %v834_v21 = vmul.f32 %v1671_v0, %v320_v18  ;;  %v321_v22 = vld [vmem:[#allocation3 + $0x930] sm:$0xff]  ;;  %v322_v23 = vld [vmem:[#allocation3 + $0x938] sm:$0xff] }
  0xa6   :  { %v323_v24 = vld [vmem:[#allocation3 + $0x940] sm:$0xff]  ;;  %1341 = vst [vmem:[#allocation6 + $0x900] sm:$0xff] %v829_v13  ;;  %1342 = vst [vmem:[#allocation6 + $0x908] sm:$0xff] %v830_v14  ;;  %v835_v25 = vmul.f32 %v1671_v0, %v321_v22  ;;  %v836_v26 = vmul.f32 %v1671_v0, %v322_v23  ;;  %v324_v28 = vld [vmem:[#allocation3 + $0x948] sm:$0xff] }
  0xa7   :  { %1343 = vst [vmem:[#allocation6 + $0x910] sm:$0xff] %v831_v15  ;;  %v837_v27 = vmul.f32 %v1671_v0, %v323_v24  ;;  %v325_v29 = vld [vmem:[#allocation3 + $0x950] sm:$0xff]  ;;  %v326_v30 = vld [vmem:[#allocation3 + $0x958] sm:$0xff]  ;;  %1344 = vst [vmem:[#allocation6 + $0x918] sm:$0xff] %v832_v19  ;;  %v838_v31 = vmul.f32 %v1671_v0, %v324_v28 }
  0xa8   :  { %1345 = vst [vmem:[#allocation6 + $0x920] sm:$0xff] %v833_v20  ;;  %1346 = vst [vmem:[#allocation6 + $0x928] sm:$0xff] %v834_v21  ;;  %v839_v32 = vmul.f32 %v1671_v0, %v325_v29  ;;  %v840_v33 = vmul.f32 %v1671_v0, %v326_v30  ;;  %v327_v34 = vld [vmem:[#allocation3 + $0x960] sm:$0xff]  ;;  %v328_v35 = vld [vmem:[#allocation3 + $0x968] sm:$0xff] }
  0xa9   :  { %v329_v36 = vld [vmem:[#allocation3 + $0x970] sm:$0xff]  ;;  %1347 = vst [vmem:[#allocation6 + $0x930] sm:$0xff] %v835_v25  ;;  %1348 = vst [vmem:[#allocation6 + $0x938] sm:$0xff] %v836_v26  ;;  %v841_v37 = vmul.f32 %v1671_v0, %v327_v34  ;;  %v842_v38 = vmul.f32 %v1671_v0, %v328_v35  ;;  %v330_v40 = vld [vmem:[#allocation3 + $0x978] sm:$0xff] }
  0xaa   :  { %1349 = vst [vmem:[#allocation6 + $0x940] sm:$0xff] %v837_v27  ;;  %v843_v39 = vmul.f32 %v1671_v0, %v329_v36  ;;  %v331_v41 = vld [vmem:[#allocation3 + $0x980] sm:$0xff]  ;;  %v332_v42 = vld [vmem:[#allocation3 + $0x988] sm:$0xff]  ;;  %1350 = vst [vmem:[#allocation6 + $0x948] sm:$0xff] %v838_v31  ;;  %v844_v43 = vmul.f32 %v1671_v0, %v330_v40 }
  0xab   :  { %1351 = vst [vmem:[#allocation6 + $0x950] sm:$0xff] %v839_v32  ;;  %1352 = vst [vmem:[#allocation6 + $0x958] sm:$0xff] %v840_v33  ;;  %v845_v44 = vmul.f32 %v1671_v0, %v331_v41  ;;  %v846_v45 = vmul.f32 %v1671_v0, %v332_v42  ;;  %v333_v46 = vld [vmem:[#allocation3 + $0x990] sm:$0xff]  ;;  %v334_v47 = vld [vmem:[#allocation3 + $0x998] sm:$0xff] }
  0xac   :  { %v335_v48 = vld [vmem:[#allocation3 + $0x9a0] sm:$0xff]  ;;  %1353 = vst [vmem:[#allocation6 + $0x960] sm:$0xff] %v841_v37  ;;  %1354 = vst [vmem:[#allocation6 + $0x968] sm:$0xff] %v842_v38  ;;  %v847_v49 = vmul.f32 %v1671_v0, %v333_v46  ;;  %v848_v50 = vmul.f32 %v1671_v0, %v334_v47  ;;  %v336_v52 = vld [vmem:[#allocation3 + $0x9a8] sm:$0xff] }
  0xad   :  { %1355 = vst [vmem:[#allocation6 + $0x970] sm:$0xff] %v843_v39  ;;  %v849_v51 = vmul.f32 %v1671_v0, %v335_v48  ;;  %v337_v53 = vld [vmem:[#allocation3 + $0x9b0] sm:$0xff]  ;;  %v338_v54 = vld [vmem:[#allocation3 + $0x9b8] sm:$0xff]  ;;  %1356 = vst [vmem:[#allocation6 + $0x978] sm:$0xff] %v844_v43  ;;  %v850_v55 = vmul.f32 %v1671_v0, %v336_v52 }
  0xae   :  { %1357 = vst [vmem:[#allocation6 + $0x980] sm:$0xff] %v845_v44  ;;  %1358 = vst [vmem:[#allocation6 + $0x988] sm:$0xff] %v846_v45  ;;  %v851_v56 = vmul.f32 %v1671_v0, %v337_v53  ;;  %v852_v57 = vmul.f32 %v1671_v0, %v338_v54  ;;  %v339_v58 = vld [vmem:[#allocation3 + $0x9c0] sm:$0xff]  ;;  %v340_v59 = vld [vmem:[#allocation3 + $0x9c8] sm:$0xff] }
  0xaf   :  { %v341_v60 = vld [vmem:[#allocation3 + $0x9d0] sm:$0xff]  ;;  %1359 = vst [vmem:[#allocation6 + $0x990] sm:$0xff] %v847_v49  ;;  %1360 = vst [vmem:[#allocation6 + $0x998] sm:$0xff] %v848_v50  ;;  %v853_v61 = vmul.f32 %v1671_v0, %v339_v58  ;;  %v854_v62 = vmul.f32 %v1671_v0, %v340_v59  ;;  %v342_v1 = vld [vmem:[#allocation3 + $0x9d8] sm:$0xff] }
  0xb0   :  { %1361 = vst [vmem:[#allocation6 + $0x9a0] sm:$0xff] %v849_v51  ;;  %v855_v63 = vmul.f32 %v1671_v0, %v341_v60  ;;  %v343_v2 = vld [vmem:[#allocation3 + $0x9e0] sm:$0xff]  ;;  %v344_v3 = vld [vmem:[#allocation3 + $0x9e8] sm:$0xff]  ;;  %1362 = vst [vmem:[#allocation6 + $0x9a8] sm:$0xff] %v850_v55  ;;  %v856_v4 = vmul.f32 %v1671_v0, %v342_v1 }
  0xb1   :  { %1363 = vst [vmem:[#allocation6 + $0x9b0] sm:$0xff] %v851_v56  ;;  %1364 = vst [vmem:[#allocation6 + $0x9b8] sm:$0xff] %v852_v57  ;;  %v857_v5 = vmul.f32 %v1671_v0, %v343_v2  ;;  %v858_v6 = vmul.f32 %v1671_v0, %v344_v3  ;;  %v345_v7 = vld [vmem:[#allocation3 + $0x9f0] sm:$0xff]  ;;  %v346_v8 = vld [vmem:[#allocation3 + $0x9f8] sm:$0xff] }
  0xb2   :  { %v347_v9 = vld [vmem:[#allocation3 + $0xa00] sm:$0xff]  ;;  %1365 = vst [vmem:[#allocation6 + $0x9c0] sm:$0xff] %v853_v61  ;;  %1366 = vst [vmem:[#allocation6 + $0x9c8] sm:$0xff] %v854_v62  ;;  %v859_v10 = vmul.f32 %v1671_v0, %v345_v7  ;;  %v860_v11 = vmul.f32 %v1671_v0, %v346_v8  ;;  %v348_v13 = vld [vmem:[#allocation3 + $0xa08] sm:$0xff] }
  0xb3   :  { %1367 = vst [vmem:[#allocation6 + $0x9d0] sm:$0xff] %v855_v63  ;;  %v861_v12 = vmul.f32 %v1671_v0, %v347_v9  ;;  %v349_v14 = vld [vmem:[#allocation3 + $0xa10] sm:$0xff]  ;;  %v350_v15 = vld [vmem:[#allocation3 + $0xa18] sm:$0xff]  ;;  %1368 = vst [vmem:[#allocation6 + $0x9d8] sm:$0xff] %v856_v4  ;;  %v862_v16 = vmul.f32 %v1671_v0, %v348_v13 }
  0xb4   :  { %1369 = vst [vmem:[#allocation6 + $0x9e0] sm:$0xff] %v857_v5  ;;  %1370 = vst [vmem:[#allocation6 + $0x9e8] sm:$0xff] %v858_v6  ;;  %v863_v17 = vmul.f32 %v1671_v0, %v349_v14  ;;  %v864_v18 = vmul.f32 %v1671_v0, %v350_v15  ;;  %v351_v19 = vld [vmem:[#allocation3 + $0xa20] sm:$0xff]  ;;  %v352_v20 = vld [vmem:[#allocation3 + $0xa28] sm:$0xff] }
  0xb5   :  { %v353_v21 = vld [vmem:[#allocation3 + $0xa30] sm:$0xff]  ;;  %1371 = vst [vmem:[#allocation6 + $0x9f0] sm:$0xff] %v859_v10  ;;  %1372 = vst [vmem:[#allocation6 + $0x9f8] sm:$0xff] %v860_v11  ;;  %v865_v22 = vmul.f32 %v1671_v0, %v351_v19  ;;  %v866_v23 = vmul.f32 %v1671_v0, %v352_v20  ;;  %v354_v25 = vld [vmem:[#allocation3 + $0xa38] sm:$0xff] }
  0xb6   :  { %1373 = vst [vmem:[#allocation6 + $0xa00] sm:$0xff] %v861_v12  ;;  %v867_v24 = vmul.f32 %v1671_v0, %v353_v21  ;;  %v355_v26 = vld [vmem:[#allocation3 + $0xa40] sm:$0xff]  ;;  %v356_v27 = vld [vmem:[#allocation3 + $0xa48] sm:$0xff]  ;;  %1374 = vst [vmem:[#allocation6 + $0xa08] sm:$0xff] %v862_v16  ;;  %v868_v28 = vmul.f32 %v1671_v0, %v354_v25 }
  0xb7   :  { %1375 = vst [vmem:[#allocation6 + $0xa10] sm:$0xff] %v863_v17  ;;  %1376 = vst [vmem:[#allocation6 + $0xa18] sm:$0xff] %v864_v18  ;;  %v869_v29 = vmul.f32 %v1671_v0, %v355_v26  ;;  %v870_v30 = vmul.f32 %v1671_v0, %v356_v27  ;;  %v357_v31 = vld [vmem:[#allocation3 + $0xa50] sm:$0xff]  ;;  %v358_v32 = vld [vmem:[#allocation3 + $0xa58] sm:$0xff] }
  0xb8   :  { %v359_v33 = vld [vmem:[#allocation3 + $0xa60] sm:$0xff]  ;;  %1377 = vst [vmem:[#allocation6 + $0xa20] sm:$0xff] %v865_v22  ;;  %1378 = vst [vmem:[#allocation6 + $0xa28] sm:$0xff] %v866_v23  ;;  %v871_v34 = vmul.f32 %v1671_v0, %v357_v31  ;;  %v872_v35 = vmul.f32 %v1671_v0, %v358_v32  ;;  %v360_v37 = vld [vmem:[#allocation3 + $0xa68] sm:$0xff] }
  0xb9   :  { %1379 = vst [vmem:[#allocation6 + $0xa30] sm:$0xff] %v867_v24  ;;  %v873_v36 = vmul.f32 %v1671_v0, %v359_v33  ;;  %v361_v38 = vld [vmem:[#allocation3 + $0xa70] sm:$0xff]  ;;  %v362_v39 = vld [vmem:[#allocation3 + $0xa78] sm:$0xff]  ;;  %1380 = vst [vmem:[#allocation6 + $0xa38] sm:$0xff] %v868_v28  ;;  %v874_v40 = vmul.f32 %v1671_v0, %v360_v37 }
  0xba   :  { %1381 = vst [vmem:[#allocation6 + $0xa40] sm:$0xff] %v869_v29  ;;  %1382 = vst [vmem:[#allocation6 + $0xa48] sm:$0xff] %v870_v30  ;;  %v875_v41 = vmul.f32 %v1671_v0, %v361_v38  ;;  %v876_v42 = vmul.f32 %v1671_v0, %v362_v39  ;;  %v363_v43 = vld [vmem:[#allocation3 + $0xa80] sm:$0xff]  ;;  %v364_v44 = vld [vmem:[#allocation3 + $0xa88] sm:$0xff] }
  0xbb   :  { %v365_v45 = vld [vmem:[#allocation3 + $0xa90] sm:$0xff]  ;;  %1383 = vst [vmem:[#allocation6 + $0xa50] sm:$0xff] %v871_v34  ;;  %1384 = vst [vmem:[#allocation6 + $0xa58] sm:$0xff] %v872_v35  ;;  %v877_v46 = vmul.f32 %v1671_v0, %v363_v43  ;;  %v878_v47 = vmul.f32 %v1671_v0, %v364_v44  ;;  %v366_v49 = vld [vmem:[#allocation3 + $0xa98] sm:$0xff] }
  0xbc   :  { %1385 = vst [vmem:[#allocation6 + $0xa60] sm:$0xff] %v873_v36  ;;  %v879_v48 = vmul.f32 %v1671_v0, %v365_v45  ;;  %v367_v50 = vld [vmem:[#allocation3 + $0xaa0] sm:$0xff]  ;;  %v368_v51 = vld [vmem:[#allocation3 + $0xaa8] sm:$0xff]  ;;  %1386 = vst [vmem:[#allocation6 + $0xa68] sm:$0xff] %v874_v40  ;;  %v880_v52 = vmul.f32 %v1671_v0, %v366_v49 }
  0xbd   :  { %1387 = vst [vmem:[#allocation6 + $0xa70] sm:$0xff] %v875_v41  ;;  %1388 = vst [vmem:[#allocation6 + $0xa78] sm:$0xff] %v876_v42  ;;  %v881_v53 = vmul.f32 %v1671_v0, %v367_v50  ;;  %v882_v54 = vmul.f32 %v1671_v0, %v368_v51  ;;  %v369_v55 = vld [vmem:[#allocation3 + $0xab0] sm:$0xff]  ;;  %v370_v56 = vld [vmem:[#allocation3 + $0xab8] sm:$0xff] }
  0xbe   :  { %v371_v57 = vld [vmem:[#allocation3 + $0xac0] sm:$0xff]  ;;  %1389 = vst [vmem:[#allocation6 + $0xa80] sm:$0xff] %v877_v46  ;;  %1390 = vst [vmem:[#allocation6 + $0xa88] sm:$0xff] %v878_v47  ;;  %v883_v58 = vmul.f32 %v1671_v0, %v369_v55  ;;  %v884_v59 = vmul.f32 %v1671_v0, %v370_v56  ;;  %v372_v61 = vld [vmem:[#allocation3 + $0xac8] sm:$0xff] }
  0xbf   :  { %1391 = vst [vmem:[#allocation6 + $0xa90] sm:$0xff] %v879_v48  ;;  %v885_v60 = vmul.f32 %v1671_v0, %v371_v57  ;;  %v373_v62 = vld [vmem:[#allocation3 + $0xad0] sm:$0xff]  ;;  %v374_v63 = vld [vmem:[#allocation3 + $0xad8] sm:$0xff]  ;;  %1392 = vst [vmem:[#allocation6 + $0xa98] sm:$0xff] %v880_v52  ;;  %v886_v1 = vmul.f32 %v1671_v0, %v372_v61 }
  0xc0   :  { %1393 = vst [vmem:[#allocation6 + $0xaa0] sm:$0xff] %v881_v53  ;;  %1394 = vst [vmem:[#allocation6 + $0xaa8] sm:$0xff] %v882_v54  ;;  %v887_v2 = vmul.f32 %v1671_v0, %v373_v62  ;;  %v888_v3 = vmul.f32 %v1671_v0, %v374_v63  ;;  %v375_v4 = vld [vmem:[#allocation3 + $0xae0] sm:$0xff]  ;;  %v376_v5 = vld [vmem:[#allocation3 + $0xae8] sm:$0xff] }
  0xc1   :  { %v377_v6 = vld [vmem:[#allocation3 + $0xaf0] sm:$0xff]  ;;  %1395 = vst [vmem:[#allocation6 + $0xab0] sm:$0xff] %v883_v58  ;;  %1396 = vst [vmem:[#allocation6 + $0xab8] sm:$0xff] %v884_v59  ;;  %v889_v7 = vmul.f32 %v1671_v0, %v375_v4  ;;  %v890_v8 = vmul.f32 %v1671_v0, %v376_v5  ;;  %v378_v10 = vld [vmem:[#allocation3 + $0xaf8] sm:$0xff] }
  0xc2   :  { %1397 = vst [vmem:[#allocation6 + $0xac0] sm:$0xff] %v885_v60  ;;  %v891_v9 = vmul.f32 %v1671_v0, %v377_v6  ;;  %v379_v11 = vld [vmem:[#allocation3 + $0xb00] sm:$0xff]  ;;  %v380_v12 = vld [vmem:[#allocation3 + $0xb08] sm:$0xff]  ;;  %1398 = vst [vmem:[#allocation6 + $0xac8] sm:$0xff] %v886_v1  ;;  %v892_v13 = vmul.f32 %v1671_v0, %v378_v10 }
  0xc3   :  { %1399 = vst [vmem:[#allocation6 + $0xad0] sm:$0xff] %v887_v2  ;;  %1400 = vst [vmem:[#allocation6 + $0xad8] sm:$0xff] %v888_v3  ;;  %v893_v14 = vmul.f32 %v1671_v0, %v379_v11  ;;  %v894_v15 = vmul.f32 %v1671_v0, %v380_v12  ;;  %v381_v16 = vld [vmem:[#allocation3 + $0xb10] sm:$0xff]  ;;  %v382_v17 = vld [vmem:[#allocation3 + $0xb18] sm:$0xff] }
  0xc4   :  { %v383_v18 = vld [vmem:[#allocation3 + $0xb20] sm:$0xff]  ;;  %1401 = vst [vmem:[#allocation6 + $0xae0] sm:$0xff] %v889_v7  ;;  %1402 = vst [vmem:[#allocation6 + $0xae8] sm:$0xff] %v890_v8  ;;  %v895_v19 = vmul.f32 %v1671_v0, %v381_v16  ;;  %v896_v20 = vmul.f32 %v1671_v0, %v382_v17  ;;  %v384_v22 = vld [vmem:[#allocation3 + $0xb28] sm:$0xff] }
  0xc5   :  { %1403 = vst [vmem:[#allocation6 + $0xaf0] sm:$0xff] %v891_v9  ;;  %v897_v21 = vmul.f32 %v1671_v0, %v383_v18  ;;  %v385_v23 = vld [vmem:[#allocation3 + $0xb30] sm:$0xff]  ;;  %v386_v24 = vld [vmem:[#allocation3 + $0xb38] sm:$0xff]  ;;  %1404 = vst [vmem:[#allocation6 + $0xaf8] sm:$0xff] %v892_v13  ;;  %v898_v25 = vmul.f32 %v1671_v0, %v384_v22 }
  0xc6   :  { %1405 = vst [vmem:[#allocation6 + $0xb00] sm:$0xff] %v893_v14  ;;  %1406 = vst [vmem:[#allocation6 + $0xb08] sm:$0xff] %v894_v15  ;;  %v899_v26 = vmul.f32 %v1671_v0, %v385_v23  ;;  %v900_v27 = vmul.f32 %v1671_v0, %v386_v24  ;;  %v387_v28 = vld [vmem:[#allocation3 + $0xb40] sm:$0xff]  ;;  %v388_v29 = vld [vmem:[#allocation3 + $0xb48] sm:$0xff] }
  0xc7   :  { %v389_v30 = vld [vmem:[#allocation3 + $0xb50] sm:$0xff]  ;;  %1407 = vst [vmem:[#allocation6 + $0xb10] sm:$0xff] %v895_v19  ;;  %1408 = vst [vmem:[#allocation6 + $0xb18] sm:$0xff] %v896_v20  ;;  %v901_v31 = vmul.f32 %v1671_v0, %v387_v28  ;;  %v902_v32 = vmul.f32 %v1671_v0, %v388_v29  ;;  %v390_v34 = vld [vmem:[#allocation3 + $0xb58] sm:$0xff] }
  0xc8   :  { %1409 = vst [vmem:[#allocation6 + $0xb20] sm:$0xff] %v897_v21  ;;  %v903_v33 = vmul.f32 %v1671_v0, %v389_v30  ;;  %v391_v35 = vld [vmem:[#allocation3 + $0xb60] sm:$0xff]  ;;  %v392_v36 = vld [vmem:[#allocation3 + $0xb68] sm:$0xff]  ;;  %1410 = vst [vmem:[#allocation6 + $0xb28] sm:$0xff] %v898_v25  ;;  %v904_v37 = vmul.f32 %v1671_v0, %v390_v34 }
  0xc9   :  { %1411 = vst [vmem:[#allocation6 + $0xb30] sm:$0xff] %v899_v26  ;;  %1412 = vst [vmem:[#allocation6 + $0xb38] sm:$0xff] %v900_v27  ;;  %v905_v38 = vmul.f32 %v1671_v0, %v391_v35  ;;  %v906_v39 = vmul.f32 %v1671_v0, %v392_v36  ;;  %v393_v40 = vld [vmem:[#allocation3 + $0xb70] sm:$0xff]  ;;  %v394_v41 = vld [vmem:[#allocation3 + $0xb78] sm:$0xff] }
  0xca   :  { %v395_v42 = vld [vmem:[#allocation3 + $0xb80] sm:$0xff]  ;;  %1413 = vst [vmem:[#allocation6 + $0xb40] sm:$0xff] %v901_v31  ;;  %1414 = vst [vmem:[#allocation6 + $0xb48] sm:$0xff] %v902_v32  ;;  %v907_v43 = vmul.f32 %v1671_v0, %v393_v40  ;;  %v908_v44 = vmul.f32 %v1671_v0, %v394_v41  ;;  %v396_v46 = vld [vmem:[#allocation3 + $0xb88] sm:$0xff] }
  0xcb   :  { %1415 = vst [vmem:[#allocation6 + $0xb50] sm:$0xff] %v903_v33  ;;  %v909_v45 = vmul.f32 %v1671_v0, %v395_v42  ;;  %v397_v47 = vld [vmem:[#allocation3 + $0xb90] sm:$0xff]  ;;  %v398_v48 = vld [vmem:[#allocation3 + $0xb98] sm:$0xff]  ;;  %1416 = vst [vmem:[#allocation6 + $0xb58] sm:$0xff] %v904_v37  ;;  %v910_v49 = vmul.f32 %v1671_v0, %v396_v46 }
  0xcc   :  { %1417 = vst [vmem:[#allocation6 + $0xb60] sm:$0xff] %v905_v38  ;;  %1418 = vst [vmem:[#allocation6 + $0xb68] sm:$0xff] %v906_v39  ;;  %v911_v50 = vmul.f32 %v1671_v0, %v397_v47  ;;  %v912_v51 = vmul.f32 %v1671_v0, %v398_v48  ;;  %v399_v52 = vld [vmem:[#allocation3 + $0xba0] sm:$0xff]  ;;  %v400_v53 = vld [vmem:[#allocation3 + $0xba8] sm:$0xff] }
  0xcd   :  { %v401_v54 = vld [vmem:[#allocation3 + $0xbb0] sm:$0xff]  ;;  %1419 = vst [vmem:[#allocation6 + $0xb70] sm:$0xff] %v907_v43  ;;  %1420 = vst [vmem:[#allocation6 + $0xb78] sm:$0xff] %v908_v44  ;;  %v913_v55 = vmul.f32 %v1671_v0, %v399_v52  ;;  %v914_v56 = vmul.f32 %v1671_v0, %v400_v53  ;;  %v402_v58 = vld [vmem:[#allocation3 + $0xbb8] sm:$0xff] }
  0xce   :  { %1421 = vst [vmem:[#allocation6 + $0xb80] sm:$0xff] %v909_v45  ;;  %v915_v57 = vmul.f32 %v1671_v0, %v401_v54  ;;  %v403_v59 = vld [vmem:[#allocation3 + $0xbc0] sm:$0xff]  ;;  %v404_v60 = vld [vmem:[#allocation3 + $0xbc8] sm:$0xff]  ;;  %1422 = vst [vmem:[#allocation6 + $0xb88] sm:$0xff] %v910_v49  ;;  %v916_v61 = vmul.f32 %v1671_v0, %v402_v58 }
  0xcf   :  { %1423 = vst [vmem:[#allocation6 + $0xb90] sm:$0xff] %v911_v50  ;;  %1424 = vst [vmem:[#allocation6 + $0xb98] sm:$0xff] %v912_v51  ;;  %v917_v62 = vmul.f32 %v1671_v0, %v403_v59  ;;  %v918_v63 = vmul.f32 %v1671_v0, %v404_v60  ;;  %v405_v1 = vld [vmem:[#allocation3 + $0xbd0] sm:$0xff]  ;;  %v406_v2 = vld [vmem:[#allocation3 + $0xbd8] sm:$0xff] }
  0xd0   :  { %v407_v3 = vld [vmem:[#allocation3 + $0xbe0] sm:$0xff]  ;;  %1425 = vst [vmem:[#allocation6 + $0xba0] sm:$0xff] %v913_v55  ;;  %1426 = vst [vmem:[#allocation6 + $0xba8] sm:$0xff] %v914_v56  ;;  %v919_v4 = vmul.f32 %v1671_v0, %v405_v1  ;;  %v920_v5 = vmul.f32 %v1671_v0, %v406_v2  ;;  %v408_v7 = vld [vmem:[#allocation3 + $0xbe8] sm:$0xff] }
  0xd1   :  { %1427 = vst [vmem:[#allocation6 + $0xbb0] sm:$0xff] %v915_v57  ;;  %v921_v6 = vmul.f32 %v1671_v0, %v407_v3  ;;  %v409_v8 = vld [vmem:[#allocation3 + $0xbf0] sm:$0xff]  ;;  %v410_v9 = vld [vmem:[#allocation3 + $0xbf8] sm:$0xff]  ;;  %1428 = vst [vmem:[#allocation6 + $0xbb8] sm:$0xff] %v916_v61  ;;  %v922_v10 = vmul.f32 %v1671_v0, %v408_v7 }
  0xd2   :  { %1429 = vst [vmem:[#allocation6 + $0xbc0] sm:$0xff] %v917_v62  ;;  %1430 = vst [vmem:[#allocation6 + $0xbc8] sm:$0xff] %v918_v63  ;;  %v923_v11 = vmul.f32 %v1671_v0, %v409_v8  ;;  %v924_v12 = vmul.f32 %v1671_v0, %v410_v9  ;;  %v411_v13 = vld [vmem:[#allocation3 + $0xc00] sm:$0xff]  ;;  %v412_v14 = vld [vmem:[#allocation3 + $0xc08] sm:$0xff] }
  0xd3   :  { %v413_v15 = vld [vmem:[#allocation3 + $0xc10] sm:$0xff]  ;;  %1431 = vst [vmem:[#allocation6 + $0xbd0] sm:$0xff] %v919_v4  ;;  %1432 = vst [vmem:[#allocation6 + $0xbd8] sm:$0xff] %v920_v5  ;;  %v925_v16 = vmul.f32 %v1671_v0, %v411_v13  ;;  %v926_v17 = vmul.f32 %v1671_v0, %v412_v14  ;;  %v414_v19 = vld [vmem:[#allocation3 + $0xc18] sm:$0xff] }
  0xd4   :  { %1433 = vst [vmem:[#allocation6 + $0xbe0] sm:$0xff] %v921_v6  ;;  %v927_v18 = vmul.f32 %v1671_v0, %v413_v15  ;;  %v415_v20 = vld [vmem:[#allocation3 + $0xc20] sm:$0xff]  ;;  %v416_v21 = vld [vmem:[#allocation3 + $0xc28] sm:$0xff]  ;;  %1434 = vst [vmem:[#allocation6 + $0xbe8] sm:$0xff] %v922_v10  ;;  %v928_v22 = vmul.f32 %v1671_v0, %v414_v19 }
  0xd5   :  { %1435 = vst [vmem:[#allocation6 + $0xbf0] sm:$0xff] %v923_v11  ;;  %1436 = vst [vmem:[#allocation6 + $0xbf8] sm:$0xff] %v924_v12  ;;  %v929_v23 = vmul.f32 %v1671_v0, %v415_v20  ;;  %v930_v24 = vmul.f32 %v1671_v0, %v416_v21  ;;  %v417_v25 = vld [vmem:[#allocation3 + $0xc30] sm:$0xff]  ;;  %v418_v26 = vld [vmem:[#allocation3 + $0xc38] sm:$0xff] }
  0xd6   :  { %v419_v27 = vld [vmem:[#allocation3 + $0xc40] sm:$0xff]  ;;  %1437 = vst [vmem:[#allocation6 + $0xc00] sm:$0xff] %v925_v16  ;;  %1438 = vst [vmem:[#allocation6 + $0xc08] sm:$0xff] %v926_v17  ;;  %v931_v28 = vmul.f32 %v1671_v0, %v417_v25  ;;  %v932_v29 = vmul.f32 %v1671_v0, %v418_v26  ;;  %v420_v31 = vld [vmem:[#allocation3 + $0xc48] sm:$0xff] }
  0xd7   :  { %1439 = vst [vmem:[#allocation6 + $0xc10] sm:$0xff] %v927_v18  ;;  %v933_v30 = vmul.f32 %v1671_v0, %v419_v27  ;;  %v421_v32 = vld [vmem:[#allocation3 + $0xc50] sm:$0xff]  ;;  %v422_v33 = vld [vmem:[#allocation3 + $0xc58] sm:$0xff]  ;;  %1440 = vst [vmem:[#allocation6 + $0xc18] sm:$0xff] %v928_v22  ;;  %v934_v34 = vmul.f32 %v1671_v0, %v420_v31 }
  0xd8   :  { %1441 = vst [vmem:[#allocation6 + $0xc20] sm:$0xff] %v929_v23  ;;  %1442 = vst [vmem:[#allocation6 + $0xc28] sm:$0xff] %v930_v24  ;;  %v935_v35 = vmul.f32 %v1671_v0, %v421_v32  ;;  %v936_v36 = vmul.f32 %v1671_v0, %v422_v33  ;;  %v423_v37 = vld [vmem:[#allocation3 + $0xc60] sm:$0xff]  ;;  %v424_v38 = vld [vmem:[#allocation3 + $0xc68] sm:$0xff] }
  0xd9   :  { %v425_v39 = vld [vmem:[#allocation3 + $0xc70] sm:$0xff]  ;;  %1443 = vst [vmem:[#allocation6 + $0xc30] sm:$0xff] %v931_v28  ;;  %1444 = vst [vmem:[#allocation6 + $0xc38] sm:$0xff] %v932_v29  ;;  %v937_v40 = vmul.f32 %v1671_v0, %v423_v37  ;;  %v938_v41 = vmul.f32 %v1671_v0, %v424_v38  ;;  %v426_v43 = vld [vmem:[#allocation3 + $0xc78] sm:$0xff] }
  0xda   :  { %1445 = vst [vmem:[#allocation6 + $0xc40] sm:$0xff] %v933_v30  ;;  %v939_v42 = vmul.f32 %v1671_v0, %v425_v39  ;;  %v427_v44 = vld [vmem:[#allocation3 + $0xc80] sm:$0xff]  ;;  %v428_v45 = vld [vmem:[#allocation3 + $0xc88] sm:$0xff]  ;;  %1446 = vst [vmem:[#allocation6 + $0xc48] sm:$0xff] %v934_v34  ;;  %v940_v46 = vmul.f32 %v1671_v0, %v426_v43 }
  0xdb   :  { %1447 = vst [vmem:[#allocation6 + $0xc50] sm:$0xff] %v935_v35  ;;  %1448 = vst [vmem:[#allocation6 + $0xc58] sm:$0xff] %v936_v36  ;;  %v941_v47 = vmul.f32 %v1671_v0, %v427_v44  ;;  %v942_v48 = vmul.f32 %v1671_v0, %v428_v45  ;;  %v429_v49 = vld [vmem:[#allocation3 + $0xc90] sm:$0xff]  ;;  %v430_v50 = vld [vmem:[#allocation3 + $0xc98] sm:$0xff] }
  0xdc   :  { %v431_v51 = vld [vmem:[#allocation3 + $0xca0] sm:$0xff]  ;;  %1449 = vst [vmem:[#allocation6 + $0xc60] sm:$0xff] %v937_v40  ;;  %1450 = vst [vmem:[#allocation6 + $0xc68] sm:$0xff] %v938_v41  ;;  %v943_v52 = vmul.f32 %v1671_v0, %v429_v49  ;;  %v944_v53 = vmul.f32 %v1671_v0, %v430_v50  ;;  %v432_v55 = vld [vmem:[#allocation3 + $0xca8] sm:$0xff] }
  0xdd   :  { %1451 = vst [vmem:[#allocation6 + $0xc70] sm:$0xff] %v939_v42  ;;  %v945_v54 = vmul.f32 %v1671_v0, %v431_v51  ;;  %v433_v56 = vld [vmem:[#allocation3 + $0xcb0] sm:$0xff]  ;;  %v434_v57 = vld [vmem:[#allocation3 + $0xcb8] sm:$0xff]  ;;  %1452 = vst [vmem:[#allocation6 + $0xc78] sm:$0xff] %v940_v46  ;;  %v946_v58 = vmul.f32 %v1671_v0, %v432_v55 }
  0xde   :  { %1453 = vst [vmem:[#allocation6 + $0xc80] sm:$0xff] %v941_v47  ;;  %1454 = vst [vmem:[#allocation6 + $0xc88] sm:$0xff] %v942_v48  ;;  %v947_v59 = vmul.f32 %v1671_v0, %v433_v56  ;;  %v948_v60 = vmul.f32 %v1671_v0, %v434_v57  ;;  %v435_v61 = vld [vmem:[#allocation3 + $0xcc0] sm:$0xff]  ;;  %v436_v62 = vld [vmem:[#allocation3 + $0xcc8] sm:$0xff] }
  0xdf   :  { %v437_v63 = vld [vmem:[#allocation3 + $0xcd0] sm:$0xff]  ;;  %1455 = vst [vmem:[#allocation6 + $0xc90] sm:$0xff] %v943_v52  ;;  %1456 = vst [vmem:[#allocation6 + $0xc98] sm:$0xff] %v944_v53  ;;  %v949_v1 = vmul.f32 %v1671_v0, %v435_v61  ;;  %v950_v2 = vmul.f32 %v1671_v0, %v436_v62  ;;  %v438_v4 = vld [vmem:[#allocation3 + $0xcd8] sm:$0xff] }
  0xe0   :  { %1457 = vst [vmem:[#allocation6 + $0xca0] sm:$0xff] %v945_v54  ;;  %v951_v3 = vmul.f32 %v1671_v0, %v437_v63  ;;  %v439_v5 = vld [vmem:[#allocation3 + $0xce0] sm:$0xff]  ;;  %v440_v6 = vld [vmem:[#allocation3 + $0xce8] sm:$0xff]  ;;  %1458 = vst [vmem:[#allocation6 + $0xca8] sm:$0xff] %v946_v58  ;;  %v952_v7 = vmul.f32 %v1671_v0, %v438_v4 }
  0xe1   :  { %1459 = vst [vmem:[#allocation6 + $0xcb0] sm:$0xff] %v947_v59  ;;  %1460 = vst [vmem:[#allocation6 + $0xcb8] sm:$0xff] %v948_v60  ;;  %v953_v8 = vmul.f32 %v1671_v0, %v439_v5  ;;  %v954_v9 = vmul.f32 %v1671_v0, %v440_v6  ;;  %v441_v10 = vld [vmem:[#allocation3 + $0xcf0] sm:$0xff]  ;;  %v442_v11 = vld [vmem:[#allocation3 + $0xcf8] sm:$0xff] }
  0xe2   :  { %v443_v12 = vld [vmem:[#allocation3 + $0xd00] sm:$0xff]  ;;  %1461 = vst [vmem:[#allocation6 + $0xcc0] sm:$0xff] %v949_v1  ;;  %1462 = vst [vmem:[#allocation6 + $0xcc8] sm:$0xff] %v950_v2  ;;  %v955_v13 = vmul.f32 %v1671_v0, %v441_v10  ;;  %v956_v14 = vmul.f32 %v1671_v0, %v442_v11  ;;  %v444_v16 = vld [vmem:[#allocation3 + $0xd08] sm:$0xff] }
  0xe3   :  { %1463 = vst [vmem:[#allocation6 + $0xcd0] sm:$0xff] %v951_v3  ;;  %v957_v15 = vmul.f32 %v1671_v0, %v443_v12  ;;  %v445_v17 = vld [vmem:[#allocation3 + $0xd10] sm:$0xff]  ;;  %v446_v18 = vld [vmem:[#allocation3 + $0xd18] sm:$0xff]  ;;  %1464 = vst [vmem:[#allocation6 + $0xcd8] sm:$0xff] %v952_v7  ;;  %v958_v19 = vmul.f32 %v1671_v0, %v444_v16 }
  0xe4   :  { %1465 = vst [vmem:[#allocation6 + $0xce0] sm:$0xff] %v953_v8  ;;  %1466 = vst [vmem:[#allocation6 + $0xce8] sm:$0xff] %v954_v9  ;;  %v959_v20 = vmul.f32 %v1671_v0, %v445_v17  ;;  %v960_v21 = vmul.f32 %v1671_v0, %v446_v18  ;;  %v447_v22 = vld [vmem:[#allocation3 + $0xd20] sm:$0xff]  ;;  %v448_v23 = vld [vmem:[#allocation3 + $0xd28] sm:$0xff] }
  0xe5   :  { %v449_v24 = vld [vmem:[#allocation3 + $0xd30] sm:$0xff]  ;;  %1467 = vst [vmem:[#allocation6 + $0xcf0] sm:$0xff] %v955_v13  ;;  %1468 = vst [vmem:[#allocation6 + $0xcf8] sm:$0xff] %v956_v14  ;;  %v961_v25 = vmul.f32 %v1671_v0, %v447_v22  ;;  %v962_v26 = vmul.f32 %v1671_v0, %v448_v23  ;;  %v450_v28 = vld [vmem:[#allocation3 + $0xd38] sm:$0xff] }
  0xe6   :  { %1469 = vst [vmem:[#allocation6 + $0xd00] sm:$0xff] %v957_v15  ;;  %v963_v27 = vmul.f32 %v1671_v0, %v449_v24  ;;  %v451_v29 = vld [vmem:[#allocation3 + $0xd40] sm:$0xff]  ;;  %v452_v30 = vld [vmem:[#allocation3 + $0xd48] sm:$0xff]  ;;  %1470 = vst [vmem:[#allocation6 + $0xd08] sm:$0xff] %v958_v19  ;;  %v964_v31 = vmul.f32 %v1671_v0, %v450_v28 }
  0xe7   :  { %1471 = vst [vmem:[#allocation6 + $0xd10] sm:$0xff] %v959_v20  ;;  %1472 = vst [vmem:[#allocation6 + $0xd18] sm:$0xff] %v960_v21  ;;  %v965_v32 = vmul.f32 %v1671_v0, %v451_v29  ;;  %v966_v33 = vmul.f32 %v1671_v0, %v452_v30  ;;  %v453_v34 = vld [vmem:[#allocation3 + $0xd50] sm:$0xff]  ;;  %v454_v35 = vld [vmem:[#allocation3 + $0xd58] sm:$0xff] }
  0xe8   :  { %v455_v36 = vld [vmem:[#allocation3 + $0xd60] sm:$0xff]  ;;  %1473 = vst [vmem:[#allocation6 + $0xd20] sm:$0xff] %v961_v25  ;;  %1474 = vst [vmem:[#allocation6 + $0xd28] sm:$0xff] %v962_v26  ;;  %v967_v37 = vmul.f32 %v1671_v0, %v453_v34  ;;  %v968_v38 = vmul.f32 %v1671_v0, %v454_v35  ;;  %v456_v40 = vld [vmem:[#allocation3 + $0xd68] sm:$0xff] }
  0xe9   :  { %1475 = vst [vmem:[#allocation6 + $0xd30] sm:$0xff] %v963_v27  ;;  %v969_v39 = vmul.f32 %v1671_v0, %v455_v36  ;;  %v457_v41 = vld [vmem:[#allocation3 + $0xd70] sm:$0xff]  ;;  %v458_v42 = vld [vmem:[#allocation3 + $0xd78] sm:$0xff]  ;;  %1476 = vst [vmem:[#allocation6 + $0xd38] sm:$0xff] %v964_v31  ;;  %v970_v43 = vmul.f32 %v1671_v0, %v456_v40 }
  0xea   :  { %1477 = vst [vmem:[#allocation6 + $0xd40] sm:$0xff] %v965_v32  ;;  %1478 = vst [vmem:[#allocation6 + $0xd48] sm:$0xff] %v966_v33  ;;  %v971_v44 = vmul.f32 %v1671_v0, %v457_v41  ;;  %v972_v45 = vmul.f32 %v1671_v0, %v458_v42  ;;  %v459_v46 = vld [vmem:[#allocation3 + $0xd80] sm:$0xff]  ;;  %v460_v47 = vld [vmem:[#allocation3 + $0xd88] sm:$0xff] }
  0xeb   :  { %v461_v48 = vld [vmem:[#allocation3 + $0xd90] sm:$0xff]  ;;  %1479 = vst [vmem:[#allocation6 + $0xd50] sm:$0xff] %v967_v37  ;;  %1480 = vst [vmem:[#allocation6 + $0xd58] sm:$0xff] %v968_v38  ;;  %v973_v49 = vmul.f32 %v1671_v0, %v459_v46  ;;  %v974_v50 = vmul.f32 %v1671_v0, %v460_v47  ;;  %v462_v52 = vld [vmem:[#allocation3 + $0xd98] sm:$0xff] }
  0xec   :  { %1481 = vst [vmem:[#allocation6 + $0xd60] sm:$0xff] %v969_v39  ;;  %v975_v51 = vmul.f32 %v1671_v0, %v461_v48  ;;  %v463_v53 = vld [vmem:[#allocation3 + $0xda0] sm:$0xff]  ;;  %v464_v54 = vld [vmem:[#allocation3 + $0xda8] sm:$0xff]  ;;  %1482 = vst [vmem:[#allocation6 + $0xd68] sm:$0xff] %v970_v43  ;;  %v976_v55 = vmul.f32 %v1671_v0, %v462_v52 }
  0xed   :  { %1483 = vst [vmem:[#allocation6 + $0xd70] sm:$0xff] %v971_v44  ;;  %1484 = vst [vmem:[#allocation6 + $0xd78] sm:$0xff] %v972_v45  ;;  %v977_v56 = vmul.f32 %v1671_v0, %v463_v53  ;;  %v978_v57 = vmul.f32 %v1671_v0, %v464_v54  ;;  %v465_v58 = vld [vmem:[#allocation3 + $0xdb0] sm:$0xff]  ;;  %v466_v59 = vld [vmem:[#allocation3 + $0xdb8] sm:$0xff] }
  0xee   :  { %v467_v60 = vld [vmem:[#allocation3 + $0xdc0] sm:$0xff]  ;;  %1485 = vst [vmem:[#allocation6 + $0xd80] sm:$0xff] %v973_v49  ;;  %1486 = vst [vmem:[#allocation6 + $0xd88] sm:$0xff] %v974_v50  ;;  %v979_v61 = vmul.f32 %v1671_v0, %v465_v58  ;;  %v980_v62 = vmul.f32 %v1671_v0, %v466_v59  ;;  %v468_v1 = vld [vmem:[#allocation3 + $0xdc8] sm:$0xff] }
  0xef   :  { %1487 = vst [vmem:[#allocation6 + $0xd90] sm:$0xff] %v975_v51  ;;  %v981_v63 = vmul.f32 %v1671_v0, %v467_v60  ;;  %v469_v2 = vld [vmem:[#allocation3 + $0xdd0] sm:$0xff]  ;;  %v470_v3 = vld [vmem:[#allocation3 + $0xdd8] sm:$0xff]  ;;  %1488 = vst [vmem:[#allocation6 + $0xd98] sm:$0xff] %v976_v55  ;;  %v982_v4 = vmul.f32 %v1671_v0, %v468_v1 }
  0xf0   :  { %1489 = vst [vmem:[#allocation6 + $0xda0] sm:$0xff] %v977_v56  ;;  %1490 = vst [vmem:[#allocation6 + $0xda8] sm:$0xff] %v978_v57  ;;  %v983_v5 = vmul.f32 %v1671_v0, %v469_v2  ;;  %v984_v6 = vmul.f32 %v1671_v0, %v470_v3  ;;  %v471_v7 = vld [vmem:[#allocation3 + $0xde0] sm:$0xff]  ;;  %v472_v8 = vld [vmem:[#allocation3 + $0xde8] sm:$0xff] }
  0xf1   :  { %v473_v9 = vld [vmem:[#allocation3 + $0xdf0] sm:$0xff]  ;;  %1491 = vst [vmem:[#allocation6 + $0xdb0] sm:$0xff] %v979_v61  ;;  %1492 = vst [vmem:[#allocation6 + $0xdb8] sm:$0xff] %v980_v62  ;;  %v985_v10 = vmul.f32 %v1671_v0, %v471_v7  ;;  %v986_v11 = vmul.f32 %v1671_v0, %v472_v8  ;;  %v474_v13 = vld [vmem:[#allocation3 + $0xdf8] sm:$0xff] }
  0xf2   :  { %1493 = vst [vmem:[#allocation6 + $0xdc0] sm:$0xff] %v981_v63  ;;  %v987_v12 = vmul.f32 %v1671_v0, %v473_v9  ;;  %v475_v14 = vld [vmem:[#allocation3 + $0xe00] sm:$0xff]  ;;  %v476_v15 = vld [vmem:[#allocation3 + $0xe08] sm:$0xff]  ;;  %1494 = vst [vmem:[#allocation6 + $0xdc8] sm:$0xff] %v982_v4  ;;  %v988_v16 = vmul.f32 %v1671_v0, %v474_v13 }
  0xf3   :  { %1495 = vst [vmem:[#allocation6 + $0xdd0] sm:$0xff] %v983_v5  ;;  %1496 = vst [vmem:[#allocation6 + $0xdd8] sm:$0xff] %v984_v6  ;;  %v989_v17 = vmul.f32 %v1671_v0, %v475_v14  ;;  %v990_v18 = vmul.f32 %v1671_v0, %v476_v15  ;;  %v477_v19 = vld [vmem:[#allocation3 + $0xe10] sm:$0xff]  ;;  %v478_v20 = vld [vmem:[#allocation3 + $0xe18] sm:$0xff] }
  0xf4   :  { %v479_v21 = vld [vmem:[#allocation3 + $0xe20] sm:$0xff]  ;;  %1497 = vst [vmem:[#allocation6 + $0xde0] sm:$0xff] %v985_v10  ;;  %1498 = vst [vmem:[#allocation6 + $0xde8] sm:$0xff] %v986_v11  ;;  %v991_v22 = vmul.f32 %v1671_v0, %v477_v19  ;;  %v992_v23 = vmul.f32 %v1671_v0, %v478_v20  ;;  %v480_v25 = vld [vmem:[#allocation3 + $0xe28] sm:$0xff] }
  0xf5   :  { %1499 = vst [vmem:[#allocation6 + $0xdf0] sm:$0xff] %v987_v12  ;;  %v993_v24 = vmul.f32 %v1671_v0, %v479_v21  ;;  %v481_v26 = vld [vmem:[#allocation3 + $0xe30] sm:$0xff]  ;;  %v482_v27 = vld [vmem:[#allocation3 + $0xe38] sm:$0xff]  ;;  %1500 = vst [vmem:[#allocation6 + $0xdf8] sm:$0xff] %v988_v16  ;;  %v994_v28 = vmul.f32 %v1671_v0, %v480_v25 }
  0xf6   :  { %1501 = vst [vmem:[#allocation6 + $0xe00] sm:$0xff] %v989_v17  ;;  %1502 = vst [vmem:[#allocation6 + $0xe08] sm:$0xff] %v990_v18  ;;  %v995_v29 = vmul.f32 %v1671_v0, %v481_v26  ;;  %v996_v30 = vmul.f32 %v1671_v0, %v482_v27  ;;  %v483_v31 = vld [vmem:[#allocation3 + $0xe40] sm:$0xff]  ;;  %v484_v32 = vld [vmem:[#allocation3 + $0xe48] sm:$0xff] }
  0xf7   :  { %v485_v33 = vld [vmem:[#allocation3 + $0xe50] sm:$0xff]  ;;  %1503 = vst [vmem:[#allocation6 + $0xe10] sm:$0xff] %v991_v22  ;;  %1504 = vst [vmem:[#allocation6 + $0xe18] sm:$0xff] %v992_v23  ;;  %v997_v34 = vmul.f32 %v1671_v0, %v483_v31  ;;  %v998_v35 = vmul.f32 %v1671_v0, %v484_v32  ;;  %v486_v37 = vld [vmem:[#allocation3 + $0xe58] sm:$0xff] }
  0xf8   :  { %1505 = vst [vmem:[#allocation6 + $0xe20] sm:$0xff] %v993_v24  ;;  %v999_v36 = vmul.f32 %v1671_v0, %v485_v33  ;;  %v487_v38 = vld [vmem:[#allocation3 + $0xe60] sm:$0xff]  ;;  %v488_v39 = vld [vmem:[#allocation3 + $0xe68] sm:$0xff]  ;;  %1506 = vst [vmem:[#allocation6 + $0xe28] sm:$0xff] %v994_v28  ;;  %v1000_v40 = vmul.f32 %v1671_v0, %v486_v37 }
  0xf9   :  { %1507 = vst [vmem:[#allocation6 + $0xe30] sm:$0xff] %v995_v29  ;;  %1508 = vst [vmem:[#allocation6 + $0xe38] sm:$0xff] %v996_v30  ;;  %v1001_v41 = vmul.f32 %v1671_v0, %v487_v38  ;;  %v1002_v42 = vmul.f32 %v1671_v0, %v488_v39  ;;  %v489_v43 = vld [vmem:[#allocation3 + $0xe70] sm:$0xff]  ;;  %v490_v44 = vld [vmem:[#allocation3 + $0xe78] sm:$0xff] }
  0xfa   :  { %v491_v45 = vld [vmem:[#allocation3 + $0xe80] sm:$0xff]  ;;  %1509 = vst [vmem:[#allocation6 + $0xe40] sm:$0xff] %v997_v34  ;;  %1510 = vst [vmem:[#allocation6 + $0xe48] sm:$0xff] %v998_v35  ;;  %v1003_v46 = vmul.f32 %v1671_v0, %v489_v43  ;;  %v1004_v47 = vmul.f32 %v1671_v0, %v490_v44  ;;  %v492_v49 = vld [vmem:[#allocation3 + $0xe88] sm:$0xff] }
  0xfb   :  { %1511 = vst [vmem:[#allocation6 + $0xe50] sm:$0xff] %v999_v36  ;;  %v1005_v48 = vmul.f32 %v1671_v0, %v491_v45  ;;  %v493_v50 = vld [vmem:[#allocation3 + $0xe90] sm:$0xff]  ;;  %v494_v51 = vld [vmem:[#allocation3 + $0xe98] sm:$0xff]  ;;  %1512 = vst [vmem:[#allocation6 + $0xe58] sm:$0xff] %v1000_v40  ;;  %v1006_v52 = vmul.f32 %v1671_v0, %v492_v49 }
  0xfc   :  { %1513 = vst [vmem:[#allocation6 + $0xe60] sm:$0xff] %v1001_v41  ;;  %1514 = vst [vmem:[#allocation6 + $0xe68] sm:$0xff] %v1002_v42  ;;  %v1007_v53 = vmul.f32 %v1671_v0, %v493_v50  ;;  %v1008_v54 = vmul.f32 %v1671_v0, %v494_v51  ;;  %v495_v55 = vld [vmem:[#allocation3 + $0xea0] sm:$0xff]  ;;  %v496_v56 = vld [vmem:[#allocation3 + $0xea8] sm:$0xff] }
  0xfd   :  { %v497_v57 = vld [vmem:[#allocation3 + $0xeb0] sm:$0xff]  ;;  %1515 = vst [vmem:[#allocation6 + $0xe70] sm:$0xff] %v1003_v46  ;;  %1516 = vst [vmem:[#allocation6 + $0xe78] sm:$0xff] %v1004_v47  ;;  %v1009_v58 = vmul.f32 %v1671_v0, %v495_v55  ;;  %v1010_v59 = vmul.f32 %v1671_v0, %v496_v56  ;;  %v498_v61 = vld [vmem:[#allocation3 + $0xeb8] sm:$0xff] }
  0xfe   :  { %1517 = vst [vmem:[#allocation6 + $0xe80] sm:$0xff] %v1005_v48  ;;  %v1011_v60 = vmul.f32 %v1671_v0, %v497_v57  ;;  %v499_v62 = vld [vmem:[#allocation3 + $0xec0] sm:$0xff]  ;;  %v500_v63 = vld [vmem:[#allocation3 + $0xec8] sm:$0xff]  ;;  %1518 = vst [vmem:[#allocation6 + $0xe88] sm:$0xff] %v1006_v52  ;;  %v1012_v1 = vmul.f32 %v1671_v0, %v498_v61 }
  0xff   :  { %1519 = vst [vmem:[#allocation6 + $0xe90] sm:$0xff] %v1007_v53  ;;  %1520 = vst [vmem:[#allocation6 + $0xe98] sm:$0xff] %v1008_v54  ;;  %v1013_v2 = vmul.f32 %v1671_v0, %v499_v62  ;;  %v1014_v3 = vmul.f32 %v1671_v0, %v500_v63  ;;  %v501_v4 = vld [vmem:[#allocation3 + $0xed0] sm:$0xff]  ;;  %v502_v5 = vld [vmem:[#allocation3 + $0xed8] sm:$0xff] }
 0x100   :  { %v503_v6 = vld [vmem:[#allocation3 + $0xee0] sm:$0xff]  ;;  %1521 = vst [vmem:[#allocation6 + $0xea0] sm:$0xff] %v1009_v58  ;;  %1522 = vst [vmem:[#allocation6 + $0xea8] sm:$0xff] %v1010_v59  ;;  %v1015_v7 = vmul.f32 %v1671_v0, %v501_v4  ;;  %v1016_v8 = vmul.f32 %v1671_v0, %v502_v5  ;;  %v504_v10 = vld [vmem:[#allocation3 + $0xee8] sm:$0xff] }
 0x101   :  { %1523 = vst [vmem:[#allocation6 + $0xeb0] sm:$0xff] %v1011_v60  ;;  %v1017_v9 = vmul.f32 %v1671_v0, %v503_v6  ;;  %v505_v11 = vld [vmem:[#allocation3 + $0xef0] sm:$0xff]  ;;  %v506_v12 = vld [vmem:[#allocation3 + $0xef8] sm:$0xff]  ;;  %1524 = vst [vmem:[#allocation6 + $0xeb8] sm:$0xff] %v1012_v1  ;;  %v1018_v13 = vmul.f32 %v1671_v0, %v504_v10 }
 0x102   :  { %1525 = vst [vmem:[#allocation6 + $0xec0] sm:$0xff] %v1013_v2  ;;  %1526 = vst [vmem:[#allocation6 + $0xec8] sm:$0xff] %v1014_v3  ;;  %v1019_v14 = vmul.f32 %v1671_v0, %v505_v11  ;;  %v1020_v15 = vmul.f32 %v1671_v0, %v506_v12  ;;  %v507_v16 = vld [vmem:[#allocation3 + $0xf00] sm:$0xff]  ;;  %v508_v17 = vld [vmem:[#allocation3 + $0xf08] sm:$0xff] }
 0x103   :  { %v509_v18 = vld [vmem:[#allocation3 + $0xf10] sm:$0xff]  ;;  %1527 = vst [vmem:[#allocation6 + $0xed0] sm:$0xff] %v1015_v7  ;;  %1528 = vst [vmem:[#allocation6 + $0xed8] sm:$0xff] %v1016_v8  ;;  %v1021_v19 = vmul.f32 %v1671_v0, %v507_v16  ;;  %v1022_v20 = vmul.f32 %v1671_v0, %v508_v17  ;;  %v510_v22 = vld [vmem:[#allocation3 + $0xf18] sm:$0xff] }
 0x104   :  { %1529 = vst [vmem:[#allocation6 + $0xee0] sm:$0xff] %v1017_v9  ;;  %v1023_v21 = vmul.f32 %v1671_v0, %v509_v18  ;;  %v511_v23 = vld [vmem:[#allocation3 + $0xf20] sm:$0xff]  ;;  %v512_v24 = vld [vmem:[#allocation3 + $0xf28] sm:$0xff]  ;;  %1530 = vst [vmem:[#allocation6 + $0xee8] sm:$0xff] %v1018_v13  ;;  %v1024_v25 = vmul.f32 %v1671_v0, %v510_v22 }
 0x105   :  { %1531 = vst [vmem:[#allocation6 + $0xef0] sm:$0xff] %v1019_v14  ;;  %1532 = vst [vmem:[#allocation6 + $0xef8] sm:$0xff] %v1020_v15  ;;  %v1025_v26 = vmul.f32 %v1671_v0, %v511_v23  ;;  %v1026_v27 = vmul.f32 %v1671_v0, %v512_v24  ;;  %v513_v28 = vld [vmem:[#allocation3 + $0xf30] sm:$0xff]  ;;  %v514_v29 = vld [vmem:[#allocation3 + $0xf38] sm:$0xff] }
 0x106   :  { %v515_v30 = vld [vmem:[#allocation3 + $0xf40] sm:$0xff]  ;;  %1533 = vst [vmem:[#allocation6 + $0xf00] sm:$0xff] %v1021_v19  ;;  %1534 = vst [vmem:[#allocation6 + $0xf08] sm:$0xff] %v1022_v20  ;;  %v1027_v31 = vmul.f32 %v1671_v0, %v513_v28  ;;  %v1028_v32 = vmul.f32 %v1671_v0, %v514_v29  ;;  %v516_v34 = vld [vmem:[#allocation3 + $0xf48] sm:$0xff] }
 0x107   :  { %1535 = vst [vmem:[#allocation6 + $0xf10] sm:$0xff] %v1023_v21  ;;  %v1029_v33 = vmul.f32 %v1671_v0, %v515_v30  ;;  %v517_v35 = vld [vmem:[#allocation3 + $0xf50] sm:$0xff]  ;;  %v518_v36 = vld [vmem:[#allocation3 + $0xf58] sm:$0xff]  ;;  %1536 = vst [vmem:[#allocation6 + $0xf18] sm:$0xff] %v1024_v25  ;;  %v1030_v37 = vmul.f32 %v1671_v0, %v516_v34 }
 0x108   :  { %1537 = vst [vmem:[#allocation6 + $0xf20] sm:$0xff] %v1025_v26  ;;  %1538 = vst [vmem:[#allocation6 + $0xf28] sm:$0xff] %v1026_v27  ;;  %v1031_v38 = vmul.f32 %v1671_v0, %v517_v35  ;;  %v1032_v39 = vmul.f32 %v1671_v0, %v518_v36  ;;  %v519_v40 = vld [vmem:[#allocation3 + $0xf60] sm:$0xff]  ;;  %v520_v41 = vld [vmem:[#allocation3 + $0xf68] sm:$0xff] }
 0x109   :  { %v521_v42 = vld [vmem:[#allocation3 + $0xf70] sm:$0xff]  ;;  %1539 = vst [vmem:[#allocation6 + $0xf30] sm:$0xff] %v1027_v31  ;;  %1540 = vst [vmem:[#allocation6 + $0xf38] sm:$0xff] %v1028_v32  ;;  %v1033_v43 = vmul.f32 %v1671_v0, %v519_v40  ;;  %v1034_v44 = vmul.f32 %v1671_v0, %v520_v41  ;;  %v522_v46 = vld [vmem:[#allocation3 + $0xf78] sm:$0xff] }
 0x10a   :  { %1541 = vst [vmem:[#allocation6 + $0xf40] sm:$0xff] %v1029_v33  ;;  %v1035_v45 = vmul.f32 %v1671_v0, %v521_v42  ;;  %v523_v47 = vld [vmem:[#allocation3 + $0xf80] sm:$0xff]  ;;  %v524_v48 = vld [vmem:[#allocation3 + $0xf88] sm:$0xff]  ;;  %1542 = vst [vmem:[#allocation6 + $0xf48] sm:$0xff] %v1030_v37  ;;  %v1036_v49 = vmul.f32 %v1671_v0, %v522_v46 }
 0x10b   :  { %1543 = vst [vmem:[#allocation6 + $0xf50] sm:$0xff] %v1031_v38  ;;  %1544 = vst [vmem:[#allocation6 + $0xf58] sm:$0xff] %v1032_v39  ;;  %v1037_v50 = vmul.f32 %v1671_v0, %v523_v47  ;;  %v1038_v51 = vmul.f32 %v1671_v0, %v524_v48  ;;  %v525_v52 = vld [vmem:[#allocation3 + $0xf90] sm:$0xff]  ;;  %v526_v53 = vld [vmem:[#allocation3 + $0xf98] sm:$0xff] }
 0x10c   :  { %v527_v54 = vld [vmem:[#allocation3 + $0xfa0] sm:$0xff]  ;;  %1545 = vst [vmem:[#allocation6 + $0xf60] sm:$0xff] %v1033_v43  ;;  %1546 = vst [vmem:[#allocation6 + $0xf68] sm:$0xff] %v1034_v44  ;;  %v1039_v55 = vmul.f32 %v1671_v0, %v525_v52  ;;  %v1040_v56 = vmul.f32 %v1671_v0, %v526_v53  ;;  %v528_v58 = vld [vmem:[#allocation3 + $0xfa8] sm:$0xff] }
 0x10d   :  { %1547 = vst [vmem:[#allocation6 + $0xf70] sm:$0xff] %v1035_v45  ;;  %v1041_v57 = vmul.f32 %v1671_v0, %v527_v54  ;;  %v529_v59 = vld [vmem:[#allocation3 + $0xfb0] sm:$0xff]  ;;  %v530_v60 = vld [vmem:[#allocation3 + $0xfb8] sm:$0xff]  ;;  %1548 = vst [vmem:[#allocation6 + $0xf78] sm:$0xff] %v1036_v49  ;;  %v1042_v61 = vmul.f32 %v1671_v0, %v528_v58 }
 0x10e   :  { %1549 = vst [vmem:[#allocation6 + $0xf80] sm:$0xff] %v1037_v50  ;;  %1550 = vst [vmem:[#allocation6 + $0xf88] sm:$0xff] %v1038_v51  ;;  %v1043_v62 = vmul.f32 %v1671_v0, %v529_v59  ;;  %v1044_v63 = vmul.f32 %v1671_v0, %v530_v60  ;;  %v531_v1 = vld [vmem:[#allocation3 + $0xfc0] sm:$0xff]  ;;  %v532_v2 = vld [vmem:[#allocation3 + $0xfc8] sm:$0xff] }
 0x10f   :  { %v533_v3 = vld [vmem:[#allocation3 + $0xfd0] sm:$0xff]  ;;  %1551 = vst [vmem:[#allocation6 + $0xf90] sm:$0xff] %v1039_v55  ;;  %1552 = vst [vmem:[#allocation6 + $0xf98] sm:$0xff] %v1040_v56  ;;  %v1045_v4 = vmul.f32 %v1671_v0, %v531_v1  ;;  %v1046_v5 = vmul.f32 %v1671_v0, %v532_v2  ;;  %v534_v7 = vld [vmem:[#allocation3 + $0xfd8] sm:$0xff] }
 0x110   :  { %1553 = vst [vmem:[#allocation6 + $0xfa0] sm:$0xff] %v1041_v57  ;;  %v1047_v6 = vmul.f32 %v1671_v0, %v533_v3  ;;  %v535_v8 = vld [vmem:[#allocation3 + $0xfe0] sm:$0xff]  ;;  %v536_v9 = vld [vmem:[#allocation3 + $0xfe8] sm:$0xff]  ;;  %1554 = vst [vmem:[#allocation6 + $0xfa8] sm:$0xff] %v1042_v61  ;;  %v1048_v10 = vmul.f32 %v1671_v0, %v534_v7 }
 0x111   :  { %1555 = vst [vmem:[#allocation6 + $0xfb0] sm:$0xff] %v1043_v62  ;;  %1556 = vst [vmem:[#allocation6 + $0xfb8] sm:$0xff] %v1044_v63  ;;  %v1049_v11 = vmul.f32 %v1671_v0, %v535_v8  ;;  %v1050_v12 = vmul.f32 %v1671_v0, %v536_v9  ;;  %v537_v13 = vld [vmem:[#allocation3 + $0xff0] sm:$0xff]  ;;  %v538_v14 = vld [vmem:[#allocation3 + $0xff8] sm:$0xff] }
 0x112   :  { %1557 = vst [vmem:[#allocation6 + $0xfc0] sm:$0xff] %v1045_v4  ;;  %1558 = vst [vmem:[#allocation6 + $0xfc8] sm:$0xff] %v1046_v5  ;;  %v1051_v15 = vmul.f32 %v1671_v0, %v537_v13  ;;  %v1052_v16 = vmul.f32 %v1671_v0, %v538_v14 }
 0x113   :  { %1559 = vst [vmem:[#allocation6 + $0xfd0] sm:$0xff] %v1047_v6  ;;  %1560 = vst [vmem:[#allocation6 + $0xfd8] sm:$0xff] %v1048_v10 }
 0x114   :  { %1561 = vst [vmem:[#allocation6 + $0xfe0] sm:$0xff] %v1049_v11  ;;  %1562 = vst [vmem:[#allocation6 + $0xfe8] sm:$0xff] %v1050_v12 }
 0x115   :  { %1563 = vst [vmem:[#allocation6 + $0xff0] sm:$0xff] %v1051_v15  ;;  %1564 = vst [vmem:[#allocation6 + $0xff8] sm:$0xff] %v1052_v16 }
 0x116   :  { %1619 = shalt.err (!%p1616_p12)
}
 0x117   :  { %s1620_s28 = scalar_lea.hbm %s2202_s2, 65536 }
 0x118   :  { %p1621_p13 = scmp.ne.s32.totalorder %s2202_s2, %s1620_s28  ;;  %p1624_p0 = scmp.lt.u32.totalorder %s1620_s28, %s2202_s2 }
 0x11a   :  { %p1626_p1 = pnand %p1624_p0, %p1621_p13 }
 0x11c   :  { %1629 = shalt.err (!%p1626_p1)
}
 0x11d   :  { %1576 = dma.vmem_to_hbm [thread:$0]  %s1571_s1, 65536, %s2202_s2, [#allocation5], %s1635_s19, %s1635_s19, %s1636_s20  }
 0x11e   :  { %1632 = dma.done.wait [#allocation5], 65536  }
 0x11f   :  { %1633 = vsyncadd [#allocation5], 4294901760 }
 0x120   :  { %1580 = vsyncpa [#allocation4], 1 }
 0x121   :  { %1581 = vsyncpa [#allocation5], 1 }

</bundles_post_ra>
